<compile_context>
chip_gen: v5e
topology: v5e:2x2
jax: 0.10.0
libtpu: 0.0.40
codegen_flags: <defaults>
</compile_context>

<pallas_src>
import functools

import numpy as np
import jax
import jax.numpy as jnp
from jax.experimental import pallas as pl
from jax.experimental.pallas import tpu as pltpu


KSIZE = 5
_CONV_VMEM_LIMIT = 40 * 1024 * 1024


# ----------------------------------------------------------------------------
# Pallas kernels
# ----------------------------------------------------------------------------
def _conv5_kernel(x_ref, w_ref, b_ref, a_ref, o_ref, acc_ref, *, k, wp, ll, cin, fold):
    """Tap-folded 5x5x5 conv, spatial-on-lanes.

    Grid = (B, Dout, k).  Per step the kernel sees one padded depth slice of
    the input as (Cin, Hp*Wp).  The 25 in-plane taps are folded into the
    contraction dim (one MXU matmul with K = 25*Cin); the 5 depth taps are
    reduced across the innermost grid axis via the f32 accumulator.  Bias +
    PReLU are fused at the last depth tap.
    """
    kd = pl.program_id(2)
    wkd = w_ref[kd]                                        # (Cout, k*k*Cin) bf16

    if fold:
        # Build (k*k*Cin, L): concat of the 25 shifted windows of the slice.
        lhs = jnp.concatenate(
            [x_ref[:, pl.ds(kh * wp + kw, ll)] for kh in range(k) for kw in range(k)],
            axis=0)
        contrib = jnp.dot(wkd, lhs, preferred_element_type=jnp.float32)

        @pl.when(kd == 0)
        def _():
            acc_ref[...] = contrib        # init from first depth tap (no zero pass)

        @pl.when(kd != 0)
        def _():
            acc_ref[...] += contrib
    else:
        # Tiny-Cin fallback (level 1, Cin=2): per-tap matmuls accumulated
        # directly into the scratch (no `part` temporary chain).
        @pl.when(kd == 0)
        def _():
            acc_ref[...] = jnp.zeros_like(acc_ref)

        for t in range(k * k):
            kh, kw = divmod(t, k)
            acc_ref[...] += jnp.dot(
                wkd[:, t * cin:(t + 1) * cin],
                x_ref[:, pl.ds(kh * wp + kw, ll)],
                preferred_element_type=jnp.float32)

    @pl.when(kd == k - 1)
    def _():
        y = acc_ref[...] + b_ref[...]                      # bias (Cout, 1)
        alpha = a_ref[0]
        o_ref[...] = jnp.where(y >= 0.0, y, alpha * y).astype(o_ref.dtype)


def _down_kernel(x_ref, w_ref, b_ref, a_ref, o_ref):
    """DownSampling matmul: (Cout, 8*Cin) @ (8*Cin, Ho*Wo) + bias + PReLU."""
    y = jnp.dot(w_ref[...], x_ref[...], preferred_element_type=jnp.float32)
    y = y + b_ref[...]
    alpha = a_ref[0]
    o_ref[...] = jnp.where(y >= 0.0, y, alpha * y).astype(o_ref.dtype)


def _gap_kernel(x_ref, o_ref, acc_ref, *, inv_n):
    """Global average pool: (B, td, C, S) slabs -> (B, C), f32 accumulation."""
    @pl.when(pl.program_id(0) == 0)
    def _():
        acc_ref[...] = jnp.zeros_like(acc_ref)

    v = x_ref[...].astype(jnp.float32)
    acc_ref[...] += jnp.sum(jnp.sum(v, axis=3), axis=1)

    @pl.when(pl.program_id(0) == pl.num_programs(0) - 1)
    def _():
        o_ref[...] = acc_ref[...] * inv_n


def _head_kernel(x_ref, w1_ref, b1_ref, w2_ref, b2_ref, o_ref):
    """Linear(500->32) -> Linear(32->4) -> softmax(dim=1)."""
    h = jnp.dot(x_ref[...], w1_ref[...], preferred_element_type=jnp.float32) + b1_ref[...]
    logits = jnp.dot(h, w2_ref[...], preferred_element_type=jnp.float32) + b2_ref[...]
    m = jnp.max(logits, axis=1, keepdims=True)
    e = jnp.exp(logits - m)
    o_ref[...] = e / jnp.sum(e, axis=1, keepdims=True)


# ----------------------------------------------------------------------------
# Wrappers
# ----------------------------------------------------------------------------
def conv5_prelu(x, p):
    """ResBlock: Conv3d(k=5, stride=1, pad=2) + PReLU on (B, D, Cin, H, W)."""
    B, D, Cin, H, W = x.shape
    w, b, alpha = p["w"], p["b"], p["alpha"]               # w: (5,5,5,Cin,Cout)
    Cout = w.shape[-1]
    k = KSIZE

    x = x.astype(jnp.bfloat16)
    # Zero-pad spatially; one extra padded H row so every in-kernel tap window
    # (length H*Wp, start kh*Wp + kw) stays in bounds.
    xp = jnp.pad(x, ((0, 0), (2, 2), (0, 0), (2, 3), (2, 2)))
    Dp, Hp, Wp = xp.shape[1], xp.shape[3], xp.shape[4]
    L = H * Wp
    x2 = xp.reshape(B, Dp, Cin, Hp * Wp)

    # Weight -> (kd, Cout, 25*Cin); K order = (kh, kw, cin) to match the lhs.
    wk = (w.reshape(k, k * k, Cin, Cout)
           .transpose(0, 3, 1, 2)
           .reshape(k, Cout, k * k * Cin)
           .astype(jnp.bfloat16))
    b2 = b.reshape(Cout, 1).astype(jnp.float32)
    a1 = jnp.reshape(alpha, (1,)).astype(jnp.float32)

    fold = (Cin % 16 == 0)   # bf16 sublane tile aligned -> fold taps into K

    out = pl.pallas_call(
        functools.partial(_conv5_kernel, k=k, wp=Wp, ll=L, cin=Cin, fold=fold),
        out_shape=jax.ShapeDtypeStruct((B, D, Cout, L), jnp.bfloat16),
        grid=(B, D, k),
        in_specs=[
            pl.BlockSpec((None, None, Cin, Hp * Wp),
                         lambda bi, di, kd: (bi, di + kd, 0, 0)),
            pl.BlockSpec(memory_space=pltpu.MemorySpace.VMEM),   # resident weight (1 buffer)
            pl.BlockSpec(memory_space=pltpu.MemorySpace.VMEM),   # bias
            pl.BlockSpec(memory_space=pltpu.MemorySpace.SMEM),   # PReLU alpha scalar
        ],
        out_specs=pl.BlockSpec((None, None, Cout, L),
                               lambda bi, di, kd: (bi, di, 0, 0)),
        scratch_shapes=[pltpu.VMEM((Cout, L), jnp.float32)],
        compiler_params=pltpu.CompilerParams(
            dimension_semantics=("parallel", "parallel", "arbitrary"),
            vmem_limit_bytes=_CONV_VMEM_LIMIT),
    )(x2, wk, b2, a1)

    # (B, D, Cout, H*Wp) -> strip pad columns (fuses with the next op's pad).
    return out.reshape(B, D, Cout, H, Wp)[..., :W]


def down_conv_prelu(x, p):
    """DownSampling: Conv3d(k=2, stride=2) + PReLU on (B, D, Cin, H, W)."""
    B, D, Cin, H, W = x.shape
    w, b, alpha = p["w"], p["b"], p["alpha"]               # w: (2,2,2,Cin,Cout)
    Cout = w.shape[-1]
    Do, Ho, Wo = D // 2, H // 2, W // 2
    S = Ho * Wo
    K = 8 * Cin

    # TODO(synk): the 2x2x2 patch gather is still an XLA-side relayout; an
    # in-kernel strided gather would save one HBM round trip.
    patches = x.astype(jnp.bfloat16).reshape(B, Do, 2, Cin, Ho, 2, Wo, 2)
    patches = patches.transpose(0, 1, 2, 5, 7, 3, 4, 6)    # (B,Do,dz,hz,wz,Cin,Ho,Wo)
    patches = patches.reshape(B, Do, K, S)

    wm = (w.reshape(8, Cin, Cout).transpose(2, 0, 1).reshape(Cout, K)
           .astype(jnp.bfloat16))
    b2 = b.reshape(Cout, 1).astype(jnp.float32)
    a1 = jnp.reshape(alpha, (1,)).astype(jnp.float32)

    out = pl.pallas_call(
        _down_kernel,
        out_shape=jax.ShapeDtypeStruct((B, Do, Cout, S), jnp.bfloat16),
        grid=(B, Do),
        in_specs=[
            pl.BlockSpec((None, None, K, S), lambda bi, di: (bi, di, 0, 0)),
            pl.BlockSpec(memory_space=pltpu.MemorySpace.VMEM),   # resident weight
            pl.BlockSpec(memory_space=pltpu.MemorySpace.VMEM),   # bias
            pl.BlockSpec(memory_space=pltpu.MemorySpace.SMEM),   # alpha
        ],
        out_specs=pl.BlockSpec((None, None, Cout, S), lambda bi, di: (bi, di, 0, 0)),
        compiler_params=pltpu.CompilerParams(
            dimension_semantics=("parallel", "parallel")),
    )(patches, wm, b2, a1)
    return out.reshape(B, Do, Cout, Ho, Wo)


def global_avg_pool(x):
    """AdaptiveAvgPool3d(1) + reshape(-1, C): (B, D, C, H, W) -> (B, C) f32."""
    B, D, C, H, W = x.shape
    S = H * W
    xf = x.reshape(B, D, C, S)
    # Pick a depth tile that divides D and keeps each block under ~4 MiB.
    slab = B * C * S * x.dtype.itemsize
    td = 1
    while td * 2 <= D and D % (td * 2) == 0 and slab * td * 2 <= (4 << 20):
        td *= 2
    return pl.pallas_call(
        functools.partial(_gap_kernel, inv_n=1.0 / (D * S)),
        out_shape=jax.ShapeDtypeStruct((B, C), jnp.float32),
        grid=(D // td,),
        in_specs=[pl.BlockSpec((B, td, C, S), lambda i: (0, i, 0, 0))],
        out_specs=pl.BlockSpec((B, C), lambda i: (0, 0)),
        scratch_shapes=[pltpu.VMEM((B, C), jnp.float32)],
        compiler_params=pltpu.CompilerParams(dimension_semantics=("arbitrary",)),
    )(xf)


def classify_head(x, p):
    B = x.shape[0]
    return pl.pallas_call(
        _head_kernel,
        out_shape=jax.ShapeDtypeStruct((B, 4), jnp.float32),
        in_specs=[pl.BlockSpec(memory_space=pltpu.MemorySpace.VMEM)] * 5,
        out_specs=pl.BlockSpec(memory_space=pltpu.MemorySpace.VMEM),
    )(x, p["w1"], p["b1"].reshape(1, -1), p["w2"], p["b2"].reshape(1, -1))


# ----------------------------------------------------------------------------
# VNet_cls forward
# ----------------------------------------------------------------------------
def vnet_cls_forward(params, img, sex, age):
    """img: (B, 2, D, H, W) NCDHW; sex: (B, 3); age: (B, 1). Returns (None, probs)."""
    # NCDHW -> (B, D, C, H, W): spatial-on-lanes layout, only a D<->C swap.
    x = jnp.transpose(img, (0, 2, 1, 3, 4)).astype(jnp.bfloat16)

    x1 = conv5_prelu(x, params["level1"][0])

    x2_in = down_conv_prelu(x1, params["down12"])
    t = x2_in
    for p in params["level2"]:
        t = conv5_prelu(t, p)
    x2 = x2_in + t

    x3_in = down_conv_prelu(x2, params["down23"])
    t = x3_in
    for p in params["level3"]:
        t = conv5_prelu(t, p)
    x3 = x3_in + t

    x4_in = down_conv_prelu(x3, params["down34"])
    t = x4_in
    for p in params["level4"]:
        t = conv5_prelu(t, p)
    x4 = x4_in + t

    x5_in = down_conv_prelu(x4, params["down45"])
    t = x5_in
    for p in params["level5"]:
        t = conv5_prelu(t, p)
    x5 = t  # level5 output: no residual add in the reference forward

    f1 = global_avg_pool(x1)
    f2 = global_avg_pool(x2)
    f3 = global_avg_pool(x3)
    f4 = global_avg_pool(x4)
    f5 = global_avg_pool(x5)

    sex = jnp.reshape(sex, (-1, 3)).astype(jnp.float32)
    age = jnp.reshape(age, (-1, 1)).astype(jnp.float32)
    classify_in = jnp.concatenate([f1, f2, f3, f4, f5, sex, age], axis=1)
    classify_out = classify_head(classify_in, params["head"])
    return None, classify_out  # segmentation head is None in the reference forward


# ----------------------------------------------------------------------------
# Deterministic parameter initialization (synthetic, matches module shapes)
# ----------------------------------------------------------------------------
def _conv_params(key, k, cin, cout):
    k1, k2 = jax.random.split(key)
    fan_in = k * k * k * cin
    w = jax.random.normal(k1, (k, k, k, cin, cout), jnp.float32) / np.sqrt(fan_in)
    b = 0.01 * jax.random.normal(k2, (cout,), jnp.float32)
    return {"w": w, "b": b, "alpha": jnp.float32(0.25)}


def init_params(key, channel_factor=1):
    n = 16 * channel_factor
    ch = (n, 2 * n, 4 * n, 8 * n, 16 * n)
    keys = iter(jax.random.split(key, 32))
    params = {
        "level1": [_conv_params(next(keys), 5, 2, ch[0])],
        "down12": _conv_params(next(keys), 2, ch[0], ch[1]),
        "level2": [_conv_params(next(keys), 5, ch[1], ch[1]) for _ in range(2)],
        "down23": _conv_params(next(keys), 2, ch[1], ch[2]),
        "level3": [_conv_params(next(keys), 5, ch[2], ch[2]) for _ in range(3)],
        "down34": _conv_params(next(keys), 2, ch[2], ch[3]),
        "level4": [_conv_params(next(keys), 5, ch[3], ch[3]) for _ in range(3)],
        "down45": _conv_params(next(keys), 2, ch[3], ch[4]),
        "level5": [_conv_params(next(keys), 5, ch[4], ch[4]) for _ in range(3)],
    }
    in_feat = sum(ch) + 1 + 3  # 16+32+64+128+256+1+3 = 500
    k1, k2, k3, k4 = jax.random.split(next(keys), 4)
    params["head"] = {
        "w1": jax.random.normal(k1, (in_feat, 32), jnp.float32) / np.sqrt(in_feat),
        "b1": 0.01 * jax.random.normal(k2, (32,), jnp.float32),
        "w2": jax.random.normal(k3, (32, 4), jnp.float32) / np.sqrt(32),
        "b2": 0.01 * jax.random.normal(k4, (4,), jnp.float32),
    }
    return params


# ----------------------------------------------------------------------------
# Pure-JAX references for spot checks (loose bf16 tolerance)
# ----------------------------------------------------------------------------
def _ref_conv5_prelu(x, p):
    w = p["w"].astype(jnp.bfloat16).astype(jnp.float32)          # (5,5,5,Cin,Cout)
    kern = jnp.transpose(w, (4, 3, 0, 1, 2))                     # (Cout,Cin,kD,kH,kW)
    xt = jnp.transpose(x.astype(jnp.bfloat16).astype(jnp.float32), (0, 2, 1, 3, 4))
    y = jax.lax.conv_general_dilated(
        xt, kern, (1, 1, 1), ((2, 2), (2, 2), (2, 2)),
        dimension_numbers=("NCDHW", "OIDHW", "NCDHW"))
    y = y + p["b"].reshape(1, -1, 1, 1, 1)
    y = jnp.where(y >= 0, y, p["alpha"] * y)
    return jnp.transpose(y, (0, 2, 1, 3, 4))                     # (B, D, Cout, H, W)


def _ref_down_prelu(x, p):
    w = p["w"].astype(jnp.bfloat16).astype(jnp.float32)          # (2,2,2,Cin,Cout)
    kern = jnp.transpose(w, (4, 3, 0, 1, 2))
    xt = jnp.transpose(x.astype(jnp.bfloat16).astype(jnp.float32), (0, 2, 1, 3, 4))
    y = jax.lax.conv_general_dilated(
        xt, kern, (2, 2, 2), "VALID",
        dimension_numbers=("NCDHW", "OIDHW", "NCDHW"))
    y = y + p["b"].reshape(1, -1, 1, 1, 1)
    y = jnp.where(y >= 0, y, p["alpha"] * y)
    return jnp.transpose(y, (0, 2, 1, 3, 4))


# ----------------------------------------------------------------------------
if __name__ == "__main__":
    key = jax.random.PRNGKey(0)
    kp, ki, ka, kc = jax.random.split(key, 4)

    # --- spot-check the conv kernels against lax.conv references -------------
    xs1 = jax.random.normal(jax.random.fold_in(kc, 0), (2, 6, 2, 6, 6), jnp.float32)
    ps1 = _conv_params(jax.random.fold_in(kc, 1), 5, 2, 16)       # fallback path
    got1 = conv5_prelu(xs1, ps1).astype(jnp.float32)
    assert bool(jnp.allclose(got1, _ref_conv5_prelu(xs1, ps1), atol=5e-2, rtol=5e-2))

    xs2 = jax.random.normal(jax.random.fold_in(kc, 2), (2, 6, 32, 6, 6), jnp.float32)
    ps2 = _conv_params(jax.random.fold_in(kc, 3), 5, 32, 32)      # folded-K path
    got2 = conv5_prelu(xs2, ps2).astype(jnp.float32)
    assert bool(jnp.allclose(got2, _ref_conv5_prelu(xs2, ps2), atol=5e-2, rtol=5e-2))

    xs3 = jax.random.normal(jax.random.fold_in(kc, 4), (2, 4, 16, 4, 4), jnp.float32)
    ps3 = _conv_params(jax.random.fold_in(kc, 5), 2, 16, 32)      # downsampling
    got3 = down_conv_prelu(xs3, ps3).astype(jnp.float32)
    assert bool(jnp.allclose(got3, _ref_down_prelu(xs3, ps3), atol=5e-2, rtol=5e-2))

    got4 = global_avg_pool(xs3.astype(jnp.bfloat16))
    want4 = jnp.mean(xs3.astype(jnp.bfloat16).astype(jnp.float32), axis=(1, 3, 4))
    assert bool(jnp.allclose(got4, want4, atol=1e-2, rtol=1e-2))

    # --- full forward pass ----------------------------------------------------
    params = init_params(kp, channel_factor=1)

    # Smallest spatial size consistent with 4 stride-2 downsamplings: 16^3.
    img = jax.random.normal(ki, (2, 2, 16, 16, 16), jnp.float32)    # NCDHW
    sex = jax.nn.one_hot(jnp.array([0, 1]), 3).astype(jnp.float32)  # (2, 3)
    age = jax.random.uniform(ka, (2, 1), jnp.float32) * 80.0        # (2, 1)

    fwd = jax.jit(vnet_cls_forward)
    seg, probs = fwd(params, img, sex, age)
    probs = jax.block_until_ready(probs)

    assert seg is None
    assert probs.shape == (2, 4)
    assert bool(jnp.all(jnp.isfinite(probs)))
    assert bool(jnp.allclose(jnp.sum(probs, axis=1), 1.0, atol=1e-3))
    print("KERNEL_OK")
</pallas_src>

<mosaic_0001>
module attributes {stable_mosaic.version = 11 : i64} {
  func.func @_conv5_kernel(%arg0: i32, %arg1: i32, %arg2: i32, %arg3: memref<1x1x2x110xbf16, #tpu.memory_space<vmem>>, %arg4: memref<5x16x50xbf16, #tpu.memory_space<vmem>>, %arg5: memref<16x1xf32, #tpu.memory_space<vmem>>, %arg6: memref<1xf32, #tpu.memory_space<smem>>, %arg7: memref<1x1x16x60xbf16, #tpu.memory_space<vmem>>, %arg8: memref<16x60xf32, #tpu.memory_space<vmem>>) attributes {dimension_semantics = [#tpu.dimension_semantics<parallel>, #tpu.dimension_semantics<parallel>, #tpu.dimension_semantics<arbitrary>], iteration_bounds = array<i64: 2, 6, 5>, scalar_prefetch = 0 : i64, scratch_operands = 1 : i64, tpu.core_type = #tpu.core_type<tc>, window_params = [{transform_indices = @transform_0, window_bounds = array<i64: 1, 1, 2, 110>}, {pipeline_mode = #tpu.pipeline_mode<synchronous>, transform_indices = @transform_1, window_bounds = array<i64: 5, 16, 50>}, {pipeline_mode = #tpu.pipeline_mode<synchronous>, transform_indices = @transform_2, window_bounds = array<i64: 16, 1>}, {transform_indices = @transform_3, window_bounds = array<i64: 1>}, {transform_indices = @transform_4, window_bounds = array<i64: 1, 1, 16, 60>}]} {
    %0 = arith.index_cast %arg2 : i32 to index
    %c0 = arith.constant 0 : index
    %c0_0 = arith.constant 0 : index
    %1 = vector.load %arg4[%0, %c0, %c0_0] : memref<5x16x50xbf16, #tpu.memory_space<vmem>>, vector<1x16x50xbf16>
    %2 = vector.shape_cast %1 : vector<1x16x50xbf16> to vector<16x50xbf16>
    %c0_i32 = arith.constant 0 : i32
    %3 = arith.cmpi eq, %arg2, %c0_i32 : i32
    %4 = arith.extui %3 : i1 to i32
    %c0_i32_1 = arith.constant 0 : i32
    %5 = arith.cmpi ne, %4, %c0_i32_1 : i32
    scf.if %5 {
      %cst_203 = arith.constant 0.000000e+00 : f32
      %184 = vector.broadcast %cst_203 : f32 to vector<16x60xf32>
      %c0_204 = arith.constant 0 : index
      %c0_205 = arith.constant 0 : index
      %185 = vector.load %arg8[%c0_204, %c0_205] : memref<16x60xf32, #tpu.memory_space<vmem>>, vector<16x60xf32>
      tpu.vector_store %arg8[%c0_204, %c0_205], %184 {strides = array<i32>} : memref<16x60xf32, #tpu.memory_space<vmem>>, vector<16x60xf32>,
    } else {
    }
    %c0_2 = arith.constant 0 : index
    %c0_3 = arith.constant 0 : index
    %6 = vector.load %arg8[%c0_2, %c0_3] : memref<16x60xf32, #tpu.memory_space<vmem>>, vector<16x60xf32>
    %7 = vector.extract_strided_slice %2 {offsets = [0, 0], sizes = [16, 2], strides = [1, 1]} : vector<16x50xbf16> to vector<16x2xbf16>
    %c0_4 = arith.constant 0 : index
    %c0_5 = arith.constant 0 : index
    %c0_6 = arith.constant 0 : index
    %c0_7 = arith.constant 0 : index
    %8 = vector.load %arg3[%c0_4, %c0_5, %c0_6, %c0_7] : memref<1x1x2x110xbf16, #tpu.memory_space<vmem>>, vector<1x1x2x60xbf16>
    %9 = vector.shape_cast %8 : vector<1x1x2x60xbf16> to vector<2x60xbf16>
    %cst = arith.constant dense<0.000000e+00> : vector<16x60xf32>
    %10 = tpu.matmul %7, %9, %cst {dimension_numbers = #tpu.dot_dimension_numbers<[1], [0], [0], [1], [0, 0, 1, 1], [], []>} : vector<16x2xbf16>, vector<2x60xbf16>, vector<16x60xf32> -> vector<16x60xf32>
    %11 = arith.addf %6, %10 : vector<16x60xf32>
    %c0_8 = arith.constant 0 : index
    %c0_9 = arith.constant 0 : index
    %12 = vector.load %arg8[%c0_8, %c0_9] : memref<16x60xf32, #tpu.memory_space<vmem>>, vector<16x60xf32>
    tpu.vector_store %arg8[%c0_8, %c0_9], %11 {strides = array<i32>} : memref<16x60xf32, #tpu.memory_space<vmem>>, vector<16x60xf32>,
    %c0_10 = arith.constant 0 : index
    %c0_11 = arith.constant 0 : index
    %13 = vector.load %arg8[%c0_10, %c0_11] : memref<16x60xf32, #tpu.memory_space<vmem>>, vector<16x60xf32>
    %14 = vector.extract_strided_slice %2 {offsets = [0, 2], sizes = [16, 2], strides = [1, 1]} : vector<16x50xbf16> to vector<16x2xbf16>
    %c0_12 = arith.constant 0 : index
    %c0_13 = arith.constant 0 : index
    %c0_14 = arith.constant 0 : index
    %c1 = arith.constant 1 : index
    %15 = vector.load %arg3[%c0_12, %c0_13, %c0_14, %c1] : memref<1x1x2x110xbf16, #tpu.memory_space<vmem>>, vector<1x1x2x60xbf16>
    %16 = vector.shape_cast %15 : vector<1x1x2x60xbf16> to vector<2x60xbf16>
    %cst_15 = arith.constant dense<0.000000e+00> : vector<16x60xf32>
    %17 = tpu.matmul %14, %16, %cst_15 {dimension_numbers = #tpu.dot_dimension_numbers<[1], [0], [0], [1], [0, 0, 1, 1], [], []>} : vector<16x2xbf16>, vector<2x60xbf16>, vector<16x60xf32> -> vector<16x60xf32>
    %18 = arith.addf %13, %17 : vector<16x60xf32>
    %c0_16 = arith.constant 0 : index
    %c0_17 = arith.constant 0 : index
    %19 = vector.load %arg8[%c0_16, %c0_17] : memref<16x60xf32, #tpu.memory_space<vmem>>, vector<16x60xf32>
    tpu.vector_store %arg8[%c0_16, %c0_17], %18 {strides = array<i32>} : memref<16x60xf32, #tpu.memory_space<vmem>>, vector<16x60xf32>,
    %c0_18 = arith.constant 0 : index
    %c0_19 = arith.constant 0 : index
    %20 = vector.load %arg8[%c0_18, %c0_19] : memref<16x60xf32, #tpu.memory_space<vmem>>, vector<16x60xf32>
    %21 = vector.extract_strided_slice %2 {offsets = [0, 4], sizes = [16, 2], strides = [1, 1]} : vector<16x50xbf16> to vector<16x2xbf16>
    %c0_20 = arith.constant 0 : index
    %c0_21 = arith.constant 0 : index
    %c0_22 = arith.constant 0 : index
    %c2 = arith.constant 2 : index
    %22 = vector.load %arg3[%c0_20, %c0_21, %c0_22, %c2] : memref<1x1x2x110xbf16, #tpu.memory_space<vmem>>, vector<1x1x2x60xbf16>
    %23 = vector.shape_cast %22 : vector<1x1x2x60xbf16> to vector<2x60xbf16>
    %cst_23 = arith.constant dense<0.000000e+00> : vector<16x60xf32>
    %24 = tpu.matmul %21, %23, %cst_23 {dimension_numbers = #tpu.dot_dimension_numbers<[1], [0], [0], [1], [0, 0, 1, 1], [], []>} : vector<16x2xbf16>, vector<2x60xbf16>, vector<16x60xf32> -> vector<16x60xf32>
    %25 = arith.addf %20, %24 : vector<16x60xf32>
    %c0_24 = arith.constant 0 : index
    %c0_25 = arith.constant 0 : index
    %26 = vector.load %arg8[%c0_24, %c0_25] : memref<16x60xf32, #tpu.memory_space<vmem>>, vector<16x60xf32>
    tpu.vector_store %arg8[%c0_24, %c0_25], %25 {strides = array<i32>} : memref<16x60xf32, #tpu.memory_space<vmem>>, vector<16x60xf32>,
    %c0_26 = arith.constant 0 : index
    %c0_27 = arith.constant 0 : index
    %27 = vector.load %arg8[%c0_26, %c0_27] : memref<16x60xf32, #tpu.memory_space<vmem>>, vector<16x60xf32>
    %28 = vector.extract_strided_slice %2 {offsets = [0, 6], sizes = [16, 2], strides = [1, 1]} : vector<16x50xbf16> to vector<16x2xbf16>
    %c0_28 = arith.constant 0 : index
    %c0_29 = arith.constant 0 : index
    %c0_30 = arith.constant 0 : index
    %c3 = arith.constant 3 : index
    %29 = vector.load %arg3[%c0_28, %c0_29, %c0_30, %c3] : memref<1x1x2x110xbf16, #tpu.memory_space<vmem>>, vector<1x1x2x60xbf16>
    %30 = vector.shape_cast %29 : vector<1x1x2x60xbf16> to vector<2x60xbf16>
    %cst_31 = arith.constant dense<0.000000e+00> : vector<16x60xf32>
    %31 = tpu.matmul %28, %30, %cst_31 {dimension_numbers = #tpu.dot_dimension_numbers<[1], [0], [0], [1], [0, 0, 1, 1], [], []>} : vector<16x2xbf16>, vector<2x60xbf16>, vector<16x60xf32> -> vector<16x60xf32>
    %32 = arith.addf %27, %31 : vector<16x60xf32>
    %c0_32 = arith.constant 0 : index
    %c0_33 = arith.constant 0 : index
    %33 = vector.load %arg8[%c0_32, %c0_33] : memref<16x60xf32, #tpu.memory_space<vmem>>, vector<16x60xf32>
    tpu.vector_store %arg8[%c0_32, %c0_33], %32 {strides = array<i32>} : memref<16x60xf32, #tpu.memory_space<vmem>>, vector<16x60xf32>,
    %c0_34 = arith.constant 0 : index
    %c0_35 = arith.constant 0 : index
    %34 = vector.load %arg8[%c0_34, %c0_35] : memref<16x60xf32, #tpu.memory_space<vmem>>, vector<16x60xf32>
    %35 = vector.extract_strided_slice %2 {offsets = [0, 8], sizes = [16, 2], strides = [1, 1]} : vector<16x50xbf16> to vector<16x2xbf16>
    %c0_36 = arith.constant 0 : index
    %c0_37 = arith.constant 0 : index
    %c0_38 = arith.constant 0 : index
    %c4 = arith.constant 4 : index
    %36 = vector.load %arg3[%c0_36, %c0_37, %c0_38, %c4] : memref<1x1x2x110xbf16, #tpu.memory_space<vmem>>, vector<1x1x2x60xbf16>
    %37 = vector.shape_cast %36 : vector<1x1x2x60xbf16> to vector<2x60xbf16>
    %cst_39 = arith.constant dense<0.000000e+00> : vector<16x60xf32>
    %38 = tpu.matmul %35, %37, %cst_39 {dimension_numbers = #tpu.dot_dimension_numbers<[1], [0], [0], [1], [0, 0, 1, 1], [], []>} : vector<16x2xbf16>, vector<2x60xbf16>, vector<16x60xf32> -> vector<16x60xf32>
    %39 = arith.addf %34, %38 : vector<16x60xf32>
    %c0_40 = arith.constant 0 : index
    %c0_41 = arith.constant 0 : index
    %40 = vector.load %arg8[%c0_40, %c0_41] : memref<16x60xf32, #tpu.memory_space<vmem>>, vector<16x60xf32>
    tpu.vector_store %arg8[%c0_40, %c0_41], %39 {strides = array<i32>} : memref<16x60xf32, #tpu.memory_space<vmem>>, vector<16x60xf32>,
    %c0_42 = arith.constant 0 : index
    %c0_43 = arith.constant 0 : index
    %41 = vector.load %arg8[%c0_42, %c0_43] : memref<16x60xf32, #tpu.memory_space<vmem>>, vector<16x60xf32>
    %42 = vector.extract_strided_slice %2 {offsets = [0, 10], sizes = [16, 2], strides = [1, 1]} : vector<16x50xbf16> to vector<16x2xbf16>
    %c0_44 = arith.constant 0 : index
    %c0_45 = arith.constant 0 : index
    %c0_46 = arith.constant 0 : index
    %c10 = arith.constant 10 : index
    %43 = vector.load %arg3[%c0_44, %c0_45, %c0_46, %c10] : memref<1x1x2x110xbf16, #tpu.memory_space<vmem>>, vector<1x1x2x60xbf16>
    %44 = vector.shape_cast %43 : vector<1x1x2x60xbf16> to vector<2x60xbf16>
    %cst_47 = arith.constant dense<0.000000e+00> : vector<16x60xf32>
    %45 = tpu.matmul %42, %44, %cst_47 {dimension_numbers = #tpu.dot_dimension_numbers<[1], [0], [0], [1], [0, 0, 1, 1], [], []>} : vector<16x2xbf16>, vector<2x60xbf16>, vector<16x60xf32> -> vector<16x60xf32>
    %46 = arith.addf %41, %45 : vector<16x60xf32>
    %c0_48 = arith.constant 0 : index
    %c0_49 = arith.constant 0 : index
    %47 = vector.load %arg8[%c0_48, %c0_49] : memref<16x60xf32, #tpu.memory_space<vmem>>, vector<16x60xf32>
    tpu.vector_store %arg8[%c0_48, %c0_49], %46 {strides = array<i32>} : memref<16x60xf32, #tpu.memory_space<vmem>>, vector<16x60xf32>,
    %c0_50 = arith.constant 0 : index
    %c0_51 = arith.constant 0 : index
    %48 = vector.load %arg8[%c0_50, %c0_51] : memref<16x60xf32, #tpu.memory_space<vmem>>, vector<16x60xf32>
    %49 = vector.extract_strided_slice %2 {offsets = [0, 12], sizes = [16, 2], strides = [1, 1]} : vector<16x50xbf16> to vector<16x2xbf16>
    %c0_52 = arith.constant 0 : index
    %c0_53 = arith.constant 0 : index
    %c0_54 = arith.constant 0 : index
    %c11 = arith.constant 11 : index
    %50 = vector.load %arg3[%c0_52, %c0_53, %c0_54, %c11] : memref<1x1x2x110xbf16, #tpu.memory_space<vmem>>, vector<1x1x2x60xbf16>
    %51 = vector.shape_cast %50 : vector<1x1x2x60xbf16> to vector<2x60xbf16>
    %cst_55 = arith.constant dense<0.000000e+00> : vector<16x60xf32>
    %52 = tpu.matmul %49, %51, %cst_55 {dimension_numbers = #tpu.dot_dimension_numbers<[1], [0], [0], [1], [0, 0, 1, 1], [], []>} : vector<16x2xbf16>, vector<2x60xbf16>, vector<16x60xf32> -> vector<16x60xf32>
    %53 = arith.addf %48, %52 : vector<16x60xf32>
    %c0_56 = arith.constant 0 : index
    %c0_57 = arith.constant 0 : index
    %54 = vector.load %arg8[%c0_56, %c0_57] : memref<16x60xf32, #tpu.memory_space<vmem>>, vector<16x60xf32>
    tpu.vector_store %arg8[%c0_56, %c0_57], %53 {strides = array<i32>} : memref<16x60xf32, #tpu.memory_space<vmem>>, vector<16x60xf32>,
    %c0_58 = arith.constant 0 : index
    %c0_59 = arith.constant 0 : index
    %55 = vector.load %arg8[%c0_58, %c0_59] : memref<16x60xf32, #tpu.memory_space<vmem>>, vector<16x60xf32>
    %56 = vector.extract_strided_slice %2 {offsets = [0, 14], sizes = [16, 2], strides = [1, 1]} : vector<16x50xbf16> to vector<16x2xbf16>
    %c0_60 = arith.constant 0 : index
    %c0_61 = arith.constant 0 : index
    %c0_62 = arith.constant 0 : index
    %c12 = arith.constant 12 : index
    %57 = vector.load %arg3[%c0_60, %c0_61, %c0_62, %c12] : memref<1x1x2x110xbf16, #tpu.memory_space<vmem>>, vector<1x1x2x60xbf16>
    %58 = vector.shape_cast %57 : vector<1x1x2x60xbf16> to vector<2x60xbf16>
    %cst_63 = arith.constant dense<0.000000e+00> : vector<16x60xf32>
    %59 = tpu.matmul %56, %58, %cst_63 {dimension_numbers = #tpu.dot_dimension_numbers<[1], [0], [0], [1], [0, 0, 1, 1], [], []>} : vector<16x2xbf16>, vector<2x60xbf16>, vector<16x60xf32> -> vector<16x60xf32>
    %60 = arith.addf %55, %59 : vector<16x60xf32>
    %c0_64 = arith.constant 0 : index
    %c0_65 = arith.constant 0 : index
    %61 = vector.load %arg8[%c0_64, %c0_65] : memref<16x60xf32, #tpu.memory_space<vmem>>, vector<16x60xf32>
    tpu.vector_store %arg8[%c0_64, %c0_65], %60 {strides = array<i32>} : memref<16x60xf32, #tpu.memory_space<vmem>>, vector<16x60xf32>,
    %c0_66 = arith.constant 0 : index
    %c0_67 = arith.constant 0 : index
    %62 = vector.load %arg8[%c0_66, %c0_67] : memref<16x60xf32, #tpu.memory_space<vmem>>, vector<16x60xf32>
    %63 = vector.extract_strided_slice %2 {offsets = [0, 16], sizes = [16, 2], strides = [1, 1]} : vector<16x50xbf16> to vector<16x2xbf16>
    %c0_68 = arith.constant 0 : index
    %c0_69 = arith.constant 0 : index
    %c0_70 = arith.constant 0 : index
    %c13 = arith.constant 13 : index
    %64 = vector.load %arg3[%c0_68, %c0_69, %c0_70, %c13] : memref<1x1x2x110xbf16, #tpu.memory_space<vmem>>, vector<1x1x2x60xbf16>
    %65 = vector.shape_cast %64 : vector<1x1x2x60xbf16> to vector<2x60xbf16>
    %cst_71 = arith.constant dense<0.000000e+00> : vector<16x60xf32>
    %66 = tpu.matmul %63, %65, %cst_71 {dimension_numbers = #tpu.dot_dimension_numbers<[1], [0], [0], [1], [0, 0, 1, 1], [], []>} : vector<16x2xbf16>, vector<2x60xbf16>, vector<16x60xf32> -> vector<16x60xf32>
    %67 = arith.addf %62, %66 : vector<16x60xf32>
    %c0_72 = arith.constant 0 : index
    %c0_73 = arith.constant 0 : index
    %68 = vector.load %arg8[%c0_72, %c0_73] : memref<16x60xf32, #tpu.memory_space<vmem>>, vector<16x60xf32>
    tpu.vector_store %arg8[%c0_72, %c0_73], %67 {strides = array<i32>} : memref<16x60xf32, #tpu.memory_space<vmem>>, vector<16x60xf32>,
    %c0_74 = arith.constant 0 : index
    %c0_75 = arith.constant 0 : index
    %69 = vector.load %arg8[%c0_74, %c0_75] : memref<16x60xf32, #tpu.memory_space<vmem>>, vector<16x60xf32>
    %70 = vector.extract_strided_slice %2 {offsets = [0, 18], sizes = [16, 2], strides = [1, 1]} : vector<16x50xbf16> to vector<16x2xbf16>
    %c0_76 = arith.constant 0 : index
    %c0_77 = arith.constant 0 : index
    %c0_78 = arith.constant 0 : index
    %c14 = arith.constant 14 : index
    %71 = vector.load %arg3[%c0_76, %c0_77, %c0_78, %c14] : memref<1x1x2x110xbf16, #tpu.memory_space<vmem>>, vector<1x1x2x60xbf16>
    %72 = vector.shape_cast %71 : vector<1x1x2x60xbf16> to vector<2x60xbf16>
    %cst_79 = arith.constant dense<0.000000e+00> : vector<16x60xf32>
    %73 = tpu.matmul %70, %72, %cst_79 {dimension_numbers = #tpu.dot_dimension_numbers<[1], [0], [0], [1], [0, 0, 1, 1], [], []>} : vector<16x2xbf16>, vector<2x60xbf16>, vector<16x60xf32> -> vector<16x60xf32>
    %74 = arith.addf %69, %73 : vector<16x60xf32>
    %c0_80 = arith.constant 0 : index
    %c0_81 = arith.constant 0 : index
    %75 = vector.load %arg8[%c0_80, %c0_81] : memref<16x60xf32, #tpu.memory_space<vmem>>, vector<16x60xf32>
    tpu.vector_store %arg8[%c0_80, %c0_81], %74 {strides = array<i32>} : memref<16x60xf32, #tpu.memory_space<vmem>>, vector<16x60xf32>,
    %c0_82 = arith.constant 0 : index
    %c0_83 = arith.constant 0 : index
    %76 = vector.load %arg8[%c0_82, %c0_83] : memref<16x60xf32, #tpu.memory_space<vmem>>, vector<16x60xf32>
    %77 = vector.extract_strided_slice %2 {offsets = [0, 20], sizes = [16, 2], strides = [1, 1]} : vector<16x50xbf16> to vector<16x2xbf16>
    %c0_84 = arith.constant 0 : index
    %c0_85 = arith.constant 0 : index
    %c0_86 = arith.constant 0 : index
    %c20 = arith.constant 20 : index
    %78 = vector.load %arg3[%c0_84, %c0_85, %c0_86, %c20] : memref<1x1x2x110xbf16, #tpu.memory_space<vmem>>, vector<1x1x2x60xbf16>
    %79 = vector.shape_cast %78 : vector<1x1x2x60xbf16> to vector<2x60xbf16>
    %cst_87 = arith.constant dense<0.000000e+00> : vector<16x60xf32>
    %80 = tpu.matmul %77, %79, %cst_87 {dimension_numbers = #tpu.dot_dimension_numbers<[1], [0], [0], [1], [0, 0, 1, 1], [], []>} : vector<16x2xbf16>, vector<2x60xbf16>, vector<16x60xf32> -> vector<16x60xf32>
    %81 = arith.addf %76, %80 : vector<16x60xf32>
    %c0_88 = arith.constant 0 : index
    %c0_89 = arith.constant 0 : index
    %82 = vector.load %arg8[%c0_88, %c0_89] : memref<16x60xf32, #tpu.memory_space<vmem>>, vector<16x60xf32>
    tpu.vector_store %arg8[%c0_88, %c0_89], %81 {strides = array<i32>} : memref<16x60xf32, #tpu.memory_space<vmem>>, vector<16x60xf32>,
    %c0_90 = arith.constant 0 : index
    %c0_91 = arith.constant 0 : index
    %83 = vector.load %arg8[%c0_90, %c0_91] : memref<16x60xf32, #tpu.memory_space<vmem>>, vector<16x60xf32>
    %84 = vector.extract_strided_slice %2 {offsets = [0, 22], sizes = [16, 2], strides = [1, 1]} : vector<16x50xbf16> to vector<16x2xbf16>
    %c0_92 = arith.constant 0 : index
    %c0_93 = arith.constant 0 : index
    %c0_94 = arith.constant 0 : index
    %c21 = arith.constant 21 : index
    %85 = vector.load %arg3[%c0_92, %c0_93, %c0_94, %c21] : memref<1x1x2x110xbf16, #tpu.memory_space<vmem>>, vector<1x1x2x60xbf16>
    %86 = vector.shape_cast %85 : vector<1x1x2x60xbf16> to vector<2x60xbf16>
    %cst_95 = arith.constant dense<0.000000e+00> : vector<16x60xf32>
    %87 = tpu.matmul %84, %86, %cst_95 {dimension_numbers = #tpu.dot_dimension_numbers<[1], [0], [0], [1], [0, 0, 1, 1], [], []>} : vector<16x2xbf16>, vector<2x60xbf16>, vector<16x60xf32> -> vector<16x60xf32>
    %88 = arith.addf %83, %87 : vector<16x60xf32>
    %c0_96 = arith.constant 0 : index
    %c0_97 = arith.constant 0 : index
    %89 = vector.load %arg8[%c0_96, %c0_97] : memref<16x60xf32, #tpu.memory_space<vmem>>, vector<16x60xf32>
    tpu.vector_store %arg8[%c0_96, %c0_97], %88 {strides = array<i32>} : memref<16x60xf32, #tpu.memory_space<vmem>>, vector<16x60xf32>,
    %c0_98 = arith.constant 0 : index
    %c0_99 = arith.constant 0 : index
    %90 = vector.load %arg8[%c0_98, %c0_99] : memref<16x60xf32, #tpu.memory_space<vmem>>, vector<16x60xf32>
    %91 = vector.extract_strided_slice %2 {offsets = [0, 24], sizes = [16, 2], strides = [1, 1]} : vector<16x50xbf16> to vector<16x2xbf16>
    %c0_100 = arith.constant 0 : index
    %c0_101 = arith.constant 0 : index
    %c0_102 = arith.constant 0 : index
    %c22 = arith.constant 22 : index
    %92 = vector.load %arg3[%c0_100, %c0_101, %c0_102, %c22] : memref<1x1x2x110xbf16, #tpu.memory_space<vmem>>, vector<1x1x2x60xbf16>
    %93 = vector.shape_cast %92 : vector<1x1x2x60xbf16> to vector<2x60xbf16>
    %cst_103 = arith.constant dense<0.000000e+00> : vector<16x60xf32>
    %94 = tpu.matmul %91, %93, %cst_103 {dimension_numbers = #tpu.dot_dimension_numbers<[1], [0], [0], [1], [0, 0, 1, 1], [], []>} : vector<16x2xbf16>, vector<2x60xbf16>, vector<16x60xf32> -> vector<16x60xf32>
    %95 = arith.addf %90, %94 : vector<16x60xf32>
    %c0_104 = arith.constant 0 : index
    %c0_105 = arith.constant 0 : index
    %96 = vector.load %arg8[%c0_104, %c0_105] : memref<16x60xf32, #tpu.memory_space<vmem>>, vector<16x60xf32>
    tpu.vector_store %arg8[%c0_104, %c0_105], %95 {strides = array<i32>} : memref<16x60xf32, #tpu.memory_space<vmem>>, vector<16x60xf32>,
    %c0_106 = arith.constant 0 : index
    %c0_107 = arith.constant 0 : index
    %97 = vector.load %arg8[%c0_106, %c0_107] : memref<16x60xf32, #tpu.memory_space<vmem>>, vector<16x60xf32>
    %98 = vector.extract_strided_slice %2 {offsets = [0, 26], sizes = [16, 2], strides = [1, 1]} : vector<16x50xbf16> to vector<16x2xbf16>
    %c0_108 = arith.constant 0 : index
    %c0_109 = arith.constant 0 : index
    %c0_110 = arith.constant 0 : index
    %c23 = arith.constant 23 : index
    %99 = vector.load %arg3[%c0_108, %c0_109, %c0_110, %c23] : memref<1x1x2x110xbf16, #tpu.memory_space<vmem>>, vector<1x1x2x60xbf16>
    %100 = vector.shape_cast %99 : vector<1x1x2x60xbf16> to vector<2x60xbf16>
    %cst_111 = arith.constant dense<0.000000e+00> : vector<16x60xf32>
    %101 = tpu.matmul %98, %100, %cst_111 {dimension_numbers = #tpu.dot_dimension_numbers<[1], [0], [0], [1], [0, 0, 1, 1], [], []>} : vector<16x2xbf16>, vector<2x60xbf16>, vector<16x60xf32> -> vector<16x60xf32>
    %102 = arith.addf %97, %101 : vector<16x60xf32>
    %c0_112 = arith.constant 0 : index
    %c0_113 = arith.constant 0 : index
    %103 = vector.load %arg8[%c0_112, %c0_113] : memref<16x60xf32, #tpu.memory_space<vmem>>, vector<16x60xf32>
    tpu.vector_store %arg8[%c0_112, %c0_113], %102 {strides = array<i32>} : memref<16x60xf32, #tpu.memory_space<vmem>>, vector<16x60xf32>,
    %c0_114 = arith.constant 0 : index
    %c0_115 = arith.constant 0 : index
    %104 = vector.load %arg8[%c0_114, %c0_115] : memref<16x60xf32, #tpu.memory_space<vmem>>, vector<16x60xf32>
    %105 = vector.extract_strided_slice %2 {offsets = [0, 28], sizes = [16, 2], strides = [1, 1]} : vector<16x50xbf16> to vector<16x2xbf16>
    %c0_116 = arith.constant 0 : index
    %c0_117 = arith.constant 0 : index
    %c0_118 = arith.constant 0 : index
    %c24 = arith.constant 24 : index
    %106 = vector.load %arg3[%c0_116, %c0_117, %c0_118, %c24] : memref<1x1x2x110xbf16, #tpu.memory_space<vmem>>, vector<1x1x2x60xbf16>
    %107 = vector.shape_cast %106 : vector<1x1x2x60xbf16> to vector<2x60xbf16>
    %cst_119 = arith.constant dense<0.000000e+00> : vector<16x60xf32>
    %108 = tpu.matmul %105, %107, %cst_119 {dimension_numbers = #tpu.dot_dimension_numbers<[1], [0], [0], [1], [0, 0, 1, 1], [], []>} : vector<16x2xbf16>, vector<2x60xbf16>, vector<16x60xf32> -> vector<16x60xf32>
    %109 = arith.addf %104, %108 : vector<16x60xf32>
    %c0_120 = arith.constant 0 : index
    %c0_121 = arith.constant 0 : index
    %110 = vector.load %arg8[%c0_120, %c0_121] : memref<16x60xf32, #tpu.memory_space<vmem>>, vector<16x60xf32>
    tpu.vector_store %arg8[%c0_120, %c0_121], %109 {strides = array<i32>} : memref<16x60xf32, #tpu.memory_space<vmem>>, vector<16x60xf32>,
    %c0_122 = arith.constant 0 : index
    %c0_123 = arith.constant 0 : index
    %111 = vector.load %arg8[%c0_122, %c0_123] : memref<16x60xf32, #tpu.memory_space<vmem>>, vector<16x60xf32>
    %112 = vector.extract_strided_slice %2 {offsets = [0, 30], sizes = [16, 2], strides = [1, 1]} : vector<16x50xbf16> to vector<16x2xbf16>
    %c0_124 = arith.constant 0 : index
    %c0_125 = arith.constant 0 : index
    %c0_126 = arith.constant 0 : index
    %c30 = arith.constant 30 : index
    %113 = vector.load %arg3[%c0_124, %c0_125, %c0_126, %c30] : memref<1x1x2x110xbf16, #tpu.memory_space<vmem>>, vector<1x1x2x60xbf16>
    %114 = vector.shape_cast %113 : vector<1x1x2x60xbf16> to vector<2x60xbf16>
    %cst_127 = arith.constant dense<0.000000e+00> : vector<16x60xf32>
    %115 = tpu.matmul %112, %114, %cst_127 {dimension_numbers = #tpu.dot_dimension_numbers<[1], [0], [0], [1], [0, 0, 1, 1], [], []>} : vector<16x2xbf16>, vector<2x60xbf16>, vector<16x60xf32> -> vector<16x60xf32>
    %116 = arith.addf %111, %115 : vector<16x60xf32>
    %c0_128 = arith.constant 0 : index
    %c0_129 = arith.constant 0 : index
    %117 = vector.load %arg8[%c0_128, %c0_129] : memref<16x60xf32, #tpu.memory_space<vmem>>, vector<16x60xf32>
    tpu.vector_store %arg8[%c0_128, %c0_129], %116 {strides = array<i32>} : memref<16x60xf32, #tpu.memory_space<vmem>>, vector<16x60xf32>,
    %c0_130 = arith.constant 0 : index
    %c0_131 = arith.constant 0 : index
    %118 = vector.load %arg8[%c0_130, %c0_131] : memref<16x60xf32, #tpu.memory_space<vmem>>, vector<16x60xf32>
    %119 = vector.extract_strided_slice %2 {offsets = [0, 32], sizes = [16, 2], strides = [1, 1]} : vector<16x50xbf16> to vector<16x2xbf16>
    %c0_132 = arith.constant 0 : index
    %c0_133 = arith.constant 0 : index
    %c0_134 = arith.constant 0 : index
    %c31 = arith.constant 31 : index
    %120 = vector.load %arg3[%c0_132, %c0_133, %c0_134, %c31] : memref<1x1x2x110xbf16, #tpu.memory_space<vmem>>, vector<1x1x2x60xbf16>
    %121 = vector.shape_cast %120 : vector<1x1x2x60xbf16> to vector<2x60xbf16>
    %cst_135 = arith.constant dense<0.000000e+00> : vector<16x60xf32>
    %122 = tpu.matmul %119, %121, %cst_135 {dimension_numbers = #tpu.dot_dimension_numbers<[1], [0], [0], [1], [0, 0, 1, 1], [], []>} : vector<16x2xbf16>, vector<2x60xbf16>, vector<16x60xf32> -> vector<16x60xf32>
    %123 = arith.addf %118, %122 : vector<16x60xf32>
    %c0_136 = arith.constant 0 : index
    %c0_137 = arith.constant 0 : index
    %124 = vector.load %arg8[%c0_136, %c0_137] : memref<16x60xf32, #tpu.memory_space<vmem>>, vector<16x60xf32>
    tpu.vector_store %arg8[%c0_136, %c0_137], %123 {strides = array<i32>} : memref<16x60xf32, #tpu.memory_space<vmem>>, vector<16x60xf32>,
    %c0_138 = arith.constant 0 : index
    %c0_139 = arith.constant 0 : index
    %125 = vector.load %arg8[%c0_138, %c0_139] : memref<16x60xf32, #tpu.memory_space<vmem>>, vector<16x60xf32>
    %126 = vector.extract_strided_slice %2 {offsets = [0, 34], sizes = [16, 2], strides = [1, 1]} : vector<16x50xbf16> to vector<16x2xbf16>
    %c0_140 = arith.constant 0 : index
    %c0_141 = arith.constant 0 : index
    %c0_142 = arith.constant 0 : index
    %c32 = arith.constant 32 : index
    %127 = vector.load %arg3[%c0_140, %c0_141, %c0_142, %c32] : memref<1x1x2x110xbf16, #tpu.memory_space<vmem>>, vector<1x1x2x60xbf16>
    %128 = vector.shape_cast %127 : vector<1x1x2x60xbf16> to vector<2x60xbf16>
    %cst_143 = arith.constant dense<0.000000e+00> : vector<16x60xf32>
    %129 = tpu.matmul %126, %128, %cst_143 {dimension_numbers = #tpu.dot_dimension_numbers<[1], [0], [0], [1], [0, 0, 1, 1], [], []>} : vector<16x2xbf16>, vector<2x60xbf16>, vector<16x60xf32> -> vector<16x60xf32>
    %130 = arith.addf %125, %129 : vector<16x60xf32>
    %c0_144 = arith.constant 0 : index
    %c0_145 = arith.constant 0 : index
    %131 = vector.load %arg8[%c0_144, %c0_145] : memref<16x60xf32, #tpu.memory_space<vmem>>, vector<16x60xf32>
    tpu.vector_store %arg8[%c0_144, %c0_145], %130 {strides = array<i32>} : memref<16x60xf32, #tpu.memory_space<vmem>>, vector<16x60xf32>,
    %c0_146 = arith.constant 0 : index
    %c0_147 = arith.constant 0 : index
    %132 = vector.load %arg8[%c0_146, %c0_147] : memref<16x60xf32, #tpu.memory_space<vmem>>, vector<16x60xf32>
    %133 = vector.extract_strided_slice %2 {offsets = [0, 36], sizes = [16, 2], strides = [1, 1]} : vector<16x50xbf16> to vector<16x2xbf16>
    %c0_148 = arith.constant 0 : index
    %c0_149 = arith.constant 0 : index
    %c0_150 = arith.constant 0 : index
    %c33 = arith.constant 33 : index
    %134 = vector.load %arg3[%c0_148, %c0_149, %c0_150, %c33] : memref<1x1x2x110xbf16, #tpu.memory_space<vmem>>, vector<1x1x2x60xbf16>
    %135 = vector.shape_cast %134 : vector<1x1x2x60xbf16> to vector<2x60xbf16>
    %cst_151 = arith.constant dense<0.000000e+00> : vector<16x60xf32>
    %136 = tpu.matmul %133, %135, %cst_151 {dimension_numbers = #tpu.dot_dimension_numbers<[1], [0], [0], [1], [0, 0, 1, 1], [], []>} : vector<16x2xbf16>, vector<2x60xbf16>, vector<16x60xf32> -> vector<16x60xf32>
    %137 = arith.addf %132, %136 : vector<16x60xf32>
    %c0_152 = arith.constant 0 : index
    %c0_153 = arith.constant 0 : index
    %138 = vector.load %arg8[%c0_152, %c0_153] : memref<16x60xf32, #tpu.memory_space<vmem>>, vector<16x60xf32>
    tpu.vector_store %arg8[%c0_152, %c0_153], %137 {strides = array<i32>} : memref<16x60xf32, #tpu.memory_space<vmem>>, vector<16x60xf32>,
    %c0_154 = arith.constant 0 : index
    %c0_155 = arith.constant 0 : index
    %139 = vector.load %arg8[%c0_154, %c0_155] : memref<16x60xf32, #tpu.memory_space<vmem>>, vector<16x60xf32>
    %140 = vector.extract_strided_slice %2 {offsets = [0, 38], sizes = [16, 2], strides = [1, 1]} : vector<16x50xbf16> to vector<16x2xbf16>
    %c0_156 = arith.constant 0 : index
    %c0_157 = arith.constant 0 : index
    %c0_158 = arith.constant 0 : index
    %c34 = arith.constant 34 : index
    %141 = vector.load %arg3[%c0_156, %c0_157, %c0_158, %c34] : memref<1x1x2x110xbf16, #tpu.memory_space<vmem>>, vector<1x1x2x60xbf16>
    %142 = vector.shape_cast %141 : vector<1x1x2x60xbf16> to vector<2x60xbf16>
    %cst_159 = arith.constant dense<0.000000e+00> : vector<16x60xf32>
    %143 = tpu.matmul %140, %142, %cst_159 {dimension_numbers = #tpu.dot_dimension_numbers<[1], [0], [0], [1], [0, 0, 1, 1], [], []>} : vector<16x2xbf16>, vector<2x60xbf16>, vector<16x60xf32> -> vector<16x60xf32>
    %144 = arith.addf %139, %143 : vector<16x60xf32>
    %c0_160 = arith.constant 0 : index
    %c0_161 = arith.constant 0 : index
    %145 = vector.load %arg8[%c0_160, %c0_161] : memref<16x60xf32, #tpu.memory_space<vmem>>, vector<16x60xf32>
    tpu.vector_store %arg8[%c0_160, %c0_161], %144 {strides = array<i32>} : memref<16x60xf32, #tpu.memory_space<vmem>>, vector<16x60xf32>,
    %c0_162 = arith.constant 0 : index
    %c0_163 = arith.constant 0 : index
    %146 = vector.load %arg8[%c0_162, %c0_163] : memref<16x60xf32, #tpu.memory_space<vmem>>, vector<16x60xf32>
    %147 = vector.extract_strided_slice %2 {offsets = [0, 40], sizes = [16, 2], strides = [1, 1]} : vector<16x50xbf16> to vector<16x2xbf16>
    %c0_164 = arith.constant 0 : index
    %c0_165 = arith.constant 0 : index
    %c0_166 = arith.constant 0 : index
    %c40 = arith.constant 40 : index
    %148 = vector.load %arg3[%c0_164, %c0_165, %c0_166, %c40] : memref<1x1x2x110xbf16, #tpu.memory_space<vmem>>, vector<1x1x2x60xbf16>
    %149 = vector.shape_cast %148 : vector<1x1x2x60xbf16> to vector<2x60xbf16>
    %cst_167 = arith.constant dense<0.000000e+00> : vector<16x60xf32>
    %150 = tpu.matmul %147, %149, %cst_167 {dimension_numbers = #tpu.dot_dimension_numbers<[1], [0], [0], [1], [0, 0, 1, 1], [], []>} : vector<16x2xbf16>, vector<2x60xbf16>, vector<16x60xf32> -> vector<16x60xf32>
    %151 = arith.addf %146, %150 : vector<16x60xf32>
    %c0_168 = arith.constant 0 : index
    %c0_169 = arith.constant 0 : index
    %152 = vector.load %arg8[%c0_168, %c0_169] : memref<16x60xf32, #tpu.memory_space<vmem>>, vector<16x60xf32>
    tpu.vector_store %arg8[%c0_168, %c0_169], %151 {strides = array<i32>} : memref<16x60xf32, #tpu.memory_space<vmem>>, vector<16x60xf32>,
    %c0_170 = arith.constant 0 : index
    %c0_171 = arith.constant 0 : index
    %153 = vector.load %arg8[%c0_170, %c0_171] : memref<16x60xf32, #tpu.memory_space<vmem>>, vector<16x60xf32>
    %154 = vector.extract_strided_slice %2 {offsets = [0, 42], sizes = [16, 2], strides = [1, 1]} : vector<16x50xbf16> to vector<16x2xbf16>
    %c0_172 = arith.constant 0 : index
    %c0_173 = arith.constant 0 : index
    %c0_174 = arith.constant 0 : index
    %c41 = arith.constant 41 : index
    %155 = vector.load %arg3[%c0_172, %c0_173, %c0_174, %c41] : memref<1x1x2x110xbf16, #tpu.memory_space<vmem>>, vector<1x1x2x60xbf16>
    %156 = vector.shape_cast %155 : vector<1x1x2x60xbf16> to vector<2x60xbf16>
    %cst_175 = arith.constant dense<0.000000e+00> : vector<16x60xf32>
    %157 = tpu.matmul %154, %156, %cst_175 {dimension_numbers = #tpu.dot_dimension_numbers<[1], [0], [0], [1], [0, 0, 1, 1], [], []>} : vector<16x2xbf16>, vector<2x60xbf16>, vector<16x60xf32> -> vector<16x60xf32>
    %158 = arith.addf %153, %157 : vector<16x60xf32>
    %c0_176 = arith.constant 0 : index
    %c0_177 = arith.constant 0 : index
    %159 = vector.load %arg8[%c0_176, %c0_177] : memref<16x60xf32, #tpu.memory_space<vmem>>, vector<16x60xf32>
    tpu.vector_store %arg8[%c0_176, %c0_177], %158 {strides = array<i32>} : memref<16x60xf32, #tpu.memory_space<vmem>>, vector<16x60xf32>,
    %c0_178 = arith.constant 0 : index
    %c0_179 = arith.constant 0 : index
    %160 = vector.load %arg8[%c0_178, %c0_179] : memref<16x60xf32, #tpu.memory_space<vmem>>, vector<16x60xf32>
    %161 = vector.extract_strided_slice %2 {offsets = [0, 44], sizes = [16, 2], strides = [1, 1]} : vector<16x50xbf16> to vector<16x2xbf16>
    %c0_180 = arith.constant 0 : index
    %c0_181 = arith.constant 0 : index
    %c0_182 = arith.constant 0 : index
    %c42 = arith.constant 42 : index
    %162 = vector.load %arg3[%c0_180, %c0_181, %c0_182, %c42] : memref<1x1x2x110xbf16, #tpu.memory_space<vmem>>, vector<1x1x2x60xbf16>
    %163 = vector.shape_cast %162 : vector<1x1x2x60xbf16> to vector<2x60xbf16>
    %cst_183 = arith.constant dense<0.000000e+00> : vector<16x60xf32>
    %164 = tpu.matmul %161, %163, %cst_183 {dimension_numbers = #tpu.dot_dimension_numbers<[1], [0], [0], [1], [0, 0, 1, 1], [], []>} : vector<16x2xbf16>, vector<2x60xbf16>, vector<16x60xf32> -> vector<16x60xf32>
    %165 = arith.addf %160, %164 : vector<16x60xf32>
    %c0_184 = arith.constant 0 : index
    %c0_185 = arith.constant 0 : index
    %166 = vector.load %arg8[%c0_184, %c0_185] : memref<16x60xf32, #tpu.memory_space<vmem>>, vector<16x60xf32>
    tpu.vector_store %arg8[%c0_184, %c0_185], %165 {strides = array<i32>} : memref<16x60xf32, #tpu.memory_space<vmem>>, vector<16x60xf32>,
    %c0_186 = arith.constant 0 : index
    %c0_187 = arith.constant 0 : index
    %167 = vector.load %arg8[%c0_186, %c0_187] : memref<16x60xf32, #tpu.memory_space<vmem>>, vector<16x60xf32>
    %168 = vector.extract_strided_slice %2 {offsets = [0, 46], sizes = [16, 2], strides = [1, 1]} : vector<16x50xbf16> to vector<16x2xbf16>
    %c0_188 = arith.constant 0 : index
    %c0_189 = arith.constant 0 : index
    %c0_190 = arith.constant 0 : index
    %c43 = arith.constant 43 : index
    %169 = vector.load %arg3[%c0_188, %c0_189, %c0_190, %c43] : memref<1x1x2x110xbf16, #tpu.memory_space<vmem>>, vector<1x1x2x60xbf16>
    %170 = vector.shape_cast %169 : vector<1x1x2x60xbf16> to vector<2x60xbf16>
    %cst_191 = arith.constant dense<0.000000e+00> : vector<16x60xf32>
    %171 = tpu.matmul %168, %170, %cst_191 {dimension_numbers = #tpu.dot_dimension_numbers<[1], [0], [0], [1], [0, 0, 1, 1], [], []>} : vector<16x2xbf16>, vector<2x60xbf16>, vector<16x60xf32> -> vector<16x60xf32>
    %172 = arith.addf %167, %171 : vector<16x60xf32>
    %c0_192 = arith.constant 0 : index
    %c0_193 = arith.constant 0 : index
    %173 = vector.load %arg8[%c0_192, %c0_193] : memref<16x60xf32, #tpu.memory_space<vmem>>, vector<16x60xf32>
    tpu.vector_store %arg8[%c0_192, %c0_193], %172 {strides = array<i32>} : memref<16x60xf32, #tpu.memory_space<vmem>>, vector<16x60xf32>,
    %c0_194 = arith.constant 0 : index
    %c0_195 = arith.constant 0 : index
    %174 = vector.load %arg8[%c0_194, %c0_195] : memref<16x60xf32, #tpu.memory_space<vmem>>, vector<16x60xf32>
    %175 = vector.extract_strided_slice %2 {offsets = [0, 48], sizes = [16, 2], strides = [1, 1]} : vector<16x50xbf16> to vector<16x2xbf16>
    %c0_196 = arith.constant 0 : index
    %c0_197 = arith.constant 0 : index
    %c0_198 = arith.constant 0 : index
    %c44 = arith.constant 44 : index
    %176 = vector.load %arg3[%c0_196, %c0_197, %c0_198, %c44] : memref<1x1x2x110xbf16, #tpu.memory_space<vmem>>, vector<1x1x2x60xbf16>
    %177 = vector.shape_cast %176 : vector<1x1x2x60xbf16> to vector<2x60xbf16>
    %cst_199 = arith.constant dense<0.000000e+00> : vector<16x60xf32>
    %178 = tpu.matmul %175, %177, %cst_199 {dimension_numbers = #tpu.dot_dimension_numbers<[1], [0], [0], [1], [0, 0, 1, 1], [], []>} : vector<16x2xbf16>, vector<2x60xbf16>, vector<16x60xf32> -> vector<16x60xf32>
    %179 = arith.addf %174, %178 : vector<16x60xf32>
    %c0_200 = arith.constant 0 : index
    %c0_201 = arith.constant 0 : index
    %180 = vector.load %arg8[%c0_200, %c0_201] : memref<16x60xf32, #tpu.memory_space<vmem>>, vector<16x60xf32>
    tpu.vector_store %arg8[%c0_200, %c0_201], %179 {strides = array<i32>} : memref<16x60xf32, #tpu.memory_space<vmem>>, vector<16x60xf32>,
    %c4_i32 = arith.constant 4 : i32
    %181 = arith.cmpi eq, %arg2, %c4_i32 : i32
    %182 = arith.extui %181 : i1 to i32
    %c0_i32_202 = arith.constant 0 : i32
    %183 = arith.cmpi ne, %182, %c0_i32_202 : i32
    scf.if %183 {
      %c0_203 = arith.constant 0 : index
      %c0_204 = arith.constant 0 : index
      %184 = vector.load %arg8[%c0_203, %c0_204] : memref<16x60xf32, #tpu.memory_space<vmem>>, vector<16x60xf32>
      %c0_205 = arith.constant 0 : index
      %c0_206 = arith.constant 0 : index
      %185 = vector.load %arg5[%c0_205, %c0_206] : memref<16x1xf32, #tpu.memory_space<vmem>>, vector<16x1xf32>
      %186 = vector.broadcast %185 : vector<16x1xf32> to vector<16x60xf32>
      %187 = arith.addf %184, %186 : vector<16x60xf32>
      %c0_207 = arith.constant 0 : index
      %188 = memref.load %arg6[%c0_207] : memref<1xf32, #tpu.memory_space<smem>>
      %cst_208 = arith.constant 0.000000e+00 : f32
      %189 = vector.broadcast %cst_208 : f32 to vector<16x60xf32>
      %190 = arith.cmpf oge, %187, %189 : vector<16x60xf32>
      %191 = vector.broadcast %188 : f32 to vector<16x60xf32>
      %192 = arith.mulf %191, %187 : vector<16x60xf32>
      %193 = arith.select %190, %187, %192 : vector<16x60xi1>, vector<16x60xf32>
      %194 = arith.truncf %193 : vector<16x60xf32> to vector<16x60xbf16>
      %c0_209 = arith.constant 0 : index
      %c0_210 = arith.constant 0 : index
      %c0_211 = arith.constant 0 : index
      %c0_212 = arith.constant 0 : index
      %195 = vector.load %arg7[%c0_209, %c0_210, %c0_211, %c0_212] : memref<1x1x16x60xbf16, #tpu.memory_space<vmem>>, vector<1x1x16x60xbf16>
      %196 = vector.shape_cast %195 : vector<1x1x16x60xbf16> to vector<16x60xbf16>
      %197 = vector.shape_cast %194 : vector<16x60xbf16> to vector<1x1x16x60xbf16>
      tpu.vector_store %arg7[%c0_209, %c0_210, %c0_211, %c0_212], %197 {strides = array<i32>} : memref<1x1x16x60xbf16, #tpu.memory_space<vmem>>, vector<1x1x16x60xbf16>,
    } else {
    }
    return
  }
  func.func @transform_0(%arg0: i32, %arg1: i32, %arg2: i32) -> (i32, i32, i32, i32) {
    %0 = arith.addi %arg1, %arg2 : i32
    %c0_i32 = arith.constant 0 : i32
    %c0_i32_0 = arith.constant 0 : i32
    %c0_i32_1 = arith.constant 0 : i32
    return %arg0, %0, %c0_i32, %c0_i32_0 : i32, i32, i32, i32
  }
  func.func @transform_1(%arg0: i32, %arg1: i32, %arg2: i32) -> (i32, i32, i32) {
    %c0_i32 = arith.constant 0 : i32
    %c0_i32_0 = arith.constant 0 : i32
    %c0_i32_1 = arith.constant 0 : i32
    %c0_i32_2 = arith.constant 0 : i32
    return %c0_i32, %c0_i32_0, %c0_i32_1 : i32, i32, i32
  }
  func.func @transform_2(%arg0: i32, %arg1: i32, %arg2: i32) -> (i32, i32) {
    %c0_i32 = arith.constant 0 : i32
    %c0_i32_0 = arith.constant 0 : i32
    %c0_i32_1 = arith.constant 0 : i32
    return %c0_i32, %c0_i32_0 : i32, i32
  }
  func.func @transform_3(%arg0: i32, %arg1: i32, %arg2: i32) -> i32 {
    %c0_i32 = arith.constant 0 : i32
    %c0_i32_0 = arith.constant 0 : i32
    return %c0_i32 : i32
  }
  func.func @transform_4(%arg0: i32, %arg1: i32, %arg2: i32) -> (i32, i32, i32, i32) {
    %c0_i32 = arith.constant 0 : i32
    %c0_i32_0 = arith.constant 0 : i32
    %c0_i32_1 = arith.constant 0 : i32
    return %arg0, %arg1, %c0_i32, %c0_i32_0 : i32, i32, i32, i32
  }
}

</mosaic_0001>

<bundles_post_ra>
// kernel: tpu_custom_call.1
= control target key start
LH: loop header
LB: loop body
LE: loop exit
PB: predicated region body
PF: predicated region fallthrough
CT: control target
= control target key end

     0   :  { %s2198_s0 = inlined_call_operand.hbm [shape: bf16[2,10,2,110], index: 0, kind: input, shape index: {}]   ;;  %s2199_s1 = inlined_call_operand.hbm [shape: bf16[5,16,50], index: 1, kind: input, shape index: {}]   ;;  %s2200_s2 = inlined_call_operand.vmem [shape: f32[16,1], index: 2, kind: input, shape index: {}]   ;;  %s2201_s3 = inlined_call_operand.<no memory space> [shape: f32[1], index: 3, kind: input, shape index: {}]   ;;  %s2202_s4 = inlined_call_operand.hbm [shape: bf16[2,6,16,60], index: 4, kind: output, shape index: {}]  }
   0x1   :  { %2211 = sst [smem:[#allocation20_spill]] %s2199_s1 }
   0x2   :  { %2212 = sst [smem:[#allocation21_spill]] %s2202_s4 }
   0x3   :  { %9 = sst [smem:[#allocation3]] %s2201_s3 }
   0x4   :  { %10 = vsyncpa [#allocation5], 0 }
   0x5   :  { %12 = vsyncpa [#allocation5 + $0x1], 0 }
   0x6   :  { %13 = vsyncpa [#allocation8], 0 }
   0x7   :  { %14 = vsyncpa [#allocation6], 0 }
   0x8   :  { %16 = vsyncpa [#allocation6 + $0x1], 0  ;;  %s1794_s17 = smov 0   ;;  %s1796_s18 = smov 0  }
   0x9   :  { %s1798_s19 = smov 0   ;;  %s1800_s20 = smov 0  }
   0xa   :  { %s1802_s21 = smov 0   ;;  %s1804_s22 = smov 0  }
   0xb   :  { %s1806_s23 = smov 0   ;;  %s1808_s3 = smov 0  }
   0xc   :  { %s1810_s24 = smov 0   ;;  %s1812_s25 = smov 0  }
   0xd   :  { %s1814_s26 = smov 0   ;;  %s1816_s27 = smov 0  }
   0xe   :  { %s1818_s28 = smov 0  }
   0xf LB: > { %2213 = sst [smem:[#allocation13_spill]] %s1675_s17  ;;  %s1301_s29 = sadd.s32 4294967295, %s1723_s28   ;;  %s1723_s28 = sphi %s1818_s28, %s22_s28   ;;  %s1719_s27 = sphi %s1816_s27, %s2248_s27   ;;  %s1715_s26 = sphi %s1814_s26, %s2247_s26   ;;  %s1711_s25 = sphi %s1812_s25, %s2246_s25   ;;  %s1707_s24 = sphi %s1810_s24, %s2245_s24   ;;  %s1703_s3 = sphi %s1808_s3, %s2235_s3   ;;  %s1699_s23 = sphi %s1806_s23, %s2234_s23   ;;  %s1695_s22 = sphi %s1804_s22, %s2244_s22   ;;  %s1691_s21 = sphi %s1802_s21, %s2243_s21   ;;  %s1687_s20 = sphi %s1800_s20, %s2242_s20   ;;  %s1683_s19 = sphi %s1798_s19, %s2241_s19   ;;  %s1679_s18 = sphi %s1796_s18, %s2240_s18   ;;  %s1675_s17 = sphi %s1794_s17, %s2239_s17  }
  0x10   : > { %2214 = sst [smem:[#allocation14_spill]] %s1711_s25  ;;  %p1303_p0 = scmp.ge.s32.totalorder %s1723_s28, 1 }
  0x11   : > { %2215 = sst [smem:[#allocation15_spill]] %s1715_s26  ;;  %p1861_p1 = scmp.eq.s32.totalorder %s1301_s29, 0 }
  0x12   : > { %p1865_p2 = scmp.eq.s32.totalorder %s1301_s29, 59  ;;  %p167_p3 = scmp.lt.s32.totalorder %s1723_s28, 61 }
  0x13   : > { %s2218_s1 = sld [smem:[#allocation20_spill]]  ;;  %s1725_s10 = smov [#allocation7]  }
  0x14   : > { %p1873_p4 = pnand %p1303_p0, %p167_p3  ;;  %s180_s11 = sshll.u32 %s1725_s10, 4  ;;  %s181_s11 = int_to_ptr.vmem [resolvable:$true] %s180_s11 }
  0x15   : > { %s1726_s12 = smov 64   ;;  %s1727_s13 = smov 4  }
  0x16   : > { %p1359_p5 = pneg %p1873_p4  ;;  %s1302_s14 = sadd.s32 4294967294, %s1723_s28  }
  0x17   : > { %s34_s15 = sadd.s32 1, %s1711_s25  ;;  %s37_s16 = sadd.s32 1, %s1715_s26 }
  0x18   : > { %p1360_p6 = pnand %p1359_p5, %p1861_p1  ;;  %p35_p7 = scmp.ge.s32.totalorder %s34_s15, 5 }
  0x19   : > { %s178_s8 = sshll.u32 %s2218_s1, 4  ;;  %s41_s29 = sadd.s32 1, %s1719_s27  ;;  %s179_s8 = int_to_ptr.hbm [resolvable:$true] %s178_s8 }
  0x1a   : > { %1362 = dma.hbm_to_vmem [thread:$0]  (!%p1360_p6), %s179_s8, 640, %s181_s11, [#allocation8], %s1726_s12, %s1726_s12, %s1727_s13  }
  0x1b   : > { %s1887_s6 = sadd.s32 %s1711_s25, %s1715_s26  ;;  %s2250_s15 = smov (%p35_p7, %s34_s15), 0 }
  0x1c   : > { %2220 = sst [smem:[#allocation16_spill]] %s2250_s15  ;;  %s2252_s16 = smov (!%p35_p7, %s37_s16), %s1715_s26 }
  0x1d   : > { %s52_s7 = sadd.s32 1, %s1695_s22  ;;  %p59_p8 = scmp.ne.s32.totalorder %s1695_s22, %s1691_s21 }
  0x1e   : > { %p39_p9 = scmp.ge.s32.totalorder %s2252_s16, 6  ;;  %p60_p10 = scmp.eq.s32.totalorder %s1723_s28, 0 }
  0x1f   : > { %p65_p11 = scmp.ne.s32.totalorder %s1691_s21, %s1687_s20  ;;  %s143_s8 = sadd.s32 1, %s1683_s19 }
  0x20   : > { %s2254_s16 = smov (%p39_p9, %s2252_s16), 0  ;;  %s2256_s29 = smov (!%p39_p9, %s41_s29), %s1719_s27 }
  0x21   : > { %2221 = sst [smem:[#allocation17_spill]] %s2254_s16  ;;  %s46_s10 = sadd.s32 %s2254_s16, %s2250_s15 }
  0x22   : > { %p1904_p12 = por %p60_p10, %p59_p8  ;;  %p43_p13 = scmp.ge.s32.totalorder %s2256_s29, 2 }
  0x23   : > { %s48_s12 = ssub.s32 %s1887_s6, %s46_s10  ;;  %p1911_p0 = por %p1861_p1, %p65_p11 }
  0x24   : > { %s139_s13 = ssub.s32 %s1715_s26, %s2254_s16  ;;  %s2258_s29 = smov (%p43_p13, %s2256_s29), 0 }
  0x25   : > { %2224 = sst [smem:[#allocation18_spill]] %s2258_s29  ;;  %p153_p3 = scmp.ne.s32.totalorder %s1683_s19, %s1679_s18 }
  0x26   : > { %p159_p5 = scmp.ne.s32.totalorder %s1679_s18, %s1675_s17  ;;  %s47_s1 = ssub.s32 %s1719_s27, %s2258_s29 }
  0x27   : > { %p160_p6 = scmp.eq.s32.totalorder %s1302_s14, 59  ;;  %s49_s15 = sor.u32 %s48_s12, %s47_s1 }
  0x28   : > { %s140_s10 = sor.u32 %s139_s13, %s47_s1  ;;  %p50_p7 = scmp.eq.s32.totalorder %s49_s15, 0 }
  0x29   : > { %p141_p8 = scmp.eq.s32.totalorder %s140_s10, 0  ;;  %p1927_p9 = por %p1865_p2, %p153_p3 }
  0x2a   : > { %p1931_p10 = por %p160_p6, %p159_p5  ;;  %p1372_p11 = scmp.lt.s32.totalorder %s1723_s28, 60 }
  0x2b   : > { %s1936_s26 = scalar_select %p50_p7, %s1695_s22, %s52_s7  }
  0x2c   : > { %s2226_s16 = scalar_select %p1931_p10, 1, 0 }
  0x2d   : > { %s1939_s17 = scalar_select %p141_p8, %s1683_s19, %s143_s8  }
  0x2e   : > { %2227 = sst [smem:[#allocation19_spill]] %s2226_s16  ;;  %s200_s29 = sand.u32 1, %s1695_s22  }
  0x2f   : > { %s1349_s14 = smul.u32 10, %s1719_s27  ;;  %s203_s12 = scalar_lea.vmem [#allocation4], %s200_s29 }
  0x30   : > { %s213_s1 = sshll.u32 %s203_s12, 4  ;;  %p1364_p13 = pnand %p1372_p11, %p1904_p12  ;;  %s214_s1 = int_to_ptr.vmem [resolvable:$true] %s213_s1 }
  0x31   : > { %s208_s5 = sadd.s32 %s1349_s14, %s1887_s6  ;;  %s201_s16 = scalar_lea.sflag [#allocation5], %s200_s29 }
  0x32   : > { %s209_s10 = scalar_lea.hbm %s2198_s0, %s208_s5  ;;  %222 = sbr.rel (%p1873_p4) target bundleno = 728 (0x2d8), region = 36 }
  0x33   : > { %s211_s4 = sshll.u32 %s209_s10, 4  ;;  %s224_s7 = sand.u32 (!%p1873_p4), 1, %s1691_s21   ;;  %s212_s4 = int_to_ptr.hbm [resolvable:$true] %s211_s4 }
  0x34   : > { %1366 = dma.hbm_to_vmem [thread:$0]  (!%p1364_p13), %s212_s4, 16, %s214_s1, %s201_s16  }
  0x35   : > { %s225_s8 = scalar_lea.sflag (!%p1873_p4), [#allocation5], %s224_s7  ;;  %s1953_s12 = scalar_lea.vmem (!%p1873_p4), [#allocation4], %s224_s7 }
  0x37   : > { %1662 = dma.done.wait (%p1911_p0), %s225_s8, 16  }
  0x38   : > { %1664 = vsyncadd (%p1911_p0), %s225_s8, 4294967280 }
  0x39   : > { %1666 = dma.done.wait (%p1861_p1), [#allocation8], 640  }
  0x3a   : > { %1668 = vsyncadd (%p1861_p1), [#allocation8], 4294966656  ;;  %s254_s4 = sand.u32 1, %s1679_s18   ;;  %s1347_s9 = sshll.u32 %s1699_s23, 3 }
  0x3b   : > { %s1308_s16 = sshll.u32 %s254_s4, 3  ;;  %s261_s29 = scalar_lea.vmem [#allocation7], %s1347_s9 }
  0x3c   : > { %v1314_v0 = vld [vmem:[%s261_s29] sm:$0xf]  ;;  %v1348_v1 = vld [vmem:[%s261_s29] sm:$0xf0]  ;;  %s1967_s6 = scalar_lea.vmem [#allocation9], %s1308_s16  ;;  %p1311_p2 = scmp.ne.s32.totalorder %s1699_s23, 0 }
  0x3e   : > { %267 = sbr.rel (%p1311_p2) target bundleno = 70 (0x46), region = 48 }
  0x43   : > { %vm268_vm0 = vcmask 490496   ;;  %v1728_v2 = vmov 0.0  }
  0x44   : > { %269 = vst.msk [vmem:[#allocation2] sm:$0xff] %vm268_vm0, %v1728_v2 }
  0x45   : > { %270 = vst.msk [vmem:[#allocation2 + $0x8] sm:$0xff] %vm268_vm0, %v1728_v2 }
  0x46 PF: > { %v308_v3 = vld [vmem:[%s1953_s12] sm:$0x1]  ;;  %s1729_s30 = smov 127   ;;  %v1972_v6 = vor.u32 %v1348_v1, %v1314_v0  ;;  %s1730_s11 = smov 126   ;;  %vm283_vm1 = vcmask 1040384   ;;  %vm279_vm2 = vcmask 15360  }
  0x47   : > { %312 = vst [vmem:[#allocation1] ss:$9 sm:$0xff] %v308_v3  ;;  %v343_v4 = vld [vmem:[%s1953_s12] sm:$0x1]  ;;  %s1731_s20 = smov 124   ;;  %s1732_s14 = smov 125  }
  0x48   : > { %v378_v7 = vld [vmem:[%s1953_s12] sm:$0x1]  ;;  %s1733_s1 = smov 120   ;;  %s1734_s5 = smov 122   ;;  %vm303_vm3 = vcmask 490496  }
  0x49   : > { %v413_v9 = vld [vmem:[%s1953_s12] sm:$0x1]  ;;  %s1735_s15 = smov 118   ;;  %s1736_s13 = smov 117  }
  0x4a   : > { %v448_v11 = vld [vmem:[%s1953_s12] sm:$0x1]  ;;  %s1737_s10 = smov 116   ;;  %s1738_s7 = smov 114  }
  0x4b   : > { %v483_v13 = vld [vmem:[%s1953_s12] sm:$0x1]  ;;  %s1739_s8 = smov 112   ;;  %s1740_s9 = smov 115  }
  0x4c   : > { %v518_v15 = vld [vmem:[%s1953_s12] sm:$0x1]  ;;  %s1741_s16 = smov 110   ;;  %s1742_s29 = smov 108  }
  0x4d   : > { %v553_v17 = vld [vmem:[%s1953_s12] sm:$0x1]  ;;  %p1341_p1 = scmp.ne.s32.totalorder %s1699_s23, 4 }
  0x4e   : > { %v313_v5 = vld [vmem:[#allocation1] sm:$0xff] }
  0x4f   : > { %315 = vrot.lane.b32.xlu0 %v313_v5, %s1729_s30  ;;  %347 = vst [vmem:[#allocation1] ss:$9 sm:$0xff] %v343_v4  ;;  %v588_v19 = vld [vmem:[%s1953_s12] sm:$0x1]  ;;  %s1743_s30 = smov 106  }
  0x50   : > { %v273_v21 = vld [vmem:[%s1953_s12] sm:$0x1] }
  0x51   : > { %v285_v22 = vsel %vm283_vm1, %v273_v21, 0  ;;  %v623_v23 = vld [vmem:[%s1953_s12] sm:$0x1] }
  0x52   : > { %294 = vmatpush.bf16.msra.mxu0 %v285_v22  ;;  %v658_v25 = vld [vmem:[%s1953_s12] sm:$0x1] }
  0x53   : > { %v693_v27 = vld [vmem:[%s1953_s12] sm:$0x1] }
  0x54   : > { %v728_v29 = vld [vmem:[%s1953_s12] sm:$0x1] }
  0x55   : > { %1316 = vmatmul.msk.bf16.vlgmr.msra.gmra.mxu0 %vm279_vm2, %v1972_v6  ;;  %v763_v31 = vld [vmem:[%s1953_s12] sm:$0x1] }
  0x56   : > { %v348_v8 = vld [vmem:[#allocation1] sm:$0xff] }
  0x57   : > { %350 = vrot.lane.b32.xlu1 %v348_v8, %s1730_s11  ;;  %309 = vrot.lane.b32.xlu0 %v1972_v6, %s1730_s11  ;;  %382 = vst [vmem:[#allocation1] ss:$9 sm:$0xff] %v378_v7  ;;  %s1744_s11 = smov 107   ;;  %v798_v33 = vld [vmem:[%s1953_s12] sm:$0x1] }
  0x58   : > { %v833_v37 = vld [vmem:[%s1953_s12] sm:$0x1] }
  0x59   : > { %v868_v42 = vld [vmem:[%s1953_s12] sm:$0x1] }
  0x5a   : > { %v903_v49 = vld [vmem:[%s1953_s12] sm:$0x1] }
  0x5b   : > { %v938_v52 = vld [vmem:[%s1953_s12] sm:$0x1] }
  0x5c   : > { %v973_v58 = vld [vmem:[%s1953_s12] sm:$0x1] }
  0x5d   : > { %v1008_v0 = vld [vmem:[%s1953_s12] sm:$0x1] }
  0x5e   : > { %v383_v10 = vld [vmem:[#allocation1] sm:$0xff] }
  0x5f   : > { %344 = vrot.lane.b32.xlu1 %v1972_v6, %s1731_s20  ;;  %417 = vst [vmem:[#allocation1] ss:$9 sm:$0xff] %v413_v9  ;;  %385 = vrot.lane.b32.xlu2 %v383_v10, %s1732_s14  ;;  %s1746_s14 = smov 105   ;;  %v1043_v3 = vld [vmem:[%s1953_s12] sm:$0x1] }
  0x60   : > { %v1078_v10 = vld [vmem:[%s1953_s12] sm:$0x1] }
  0x66   : > { %v418_v12 = vld [vmem:[#allocation1] sm:$0xff] }
  0x67   : > { %420 = vrot.lane.b32.xlu0 %v418_v12, %s1731_s20  ;;  %414 = vrot.lane.b32.xlu1 %v1972_v6, %s1733_s1  ;;  %452 = vst [vmem:[#allocation1] ss:$9 sm:$0xff] %v448_v11  ;;  %s1745_s20 = smov 104   ;;  %s1747_s1 = smov 102  }
  0x68   : > { %379 = vrot.lane.b32.xlu2 %v1972_v6, %s1734_s5  ;;  %s1748_s5 = smov 100  }
  0x6e   : > { %v453_v14 = vld [vmem:[#allocation1] sm:$0xff] }
  0x6f   : > { %449 = vrot.lane.b32.xlu0 %v1972_v6, %s1735_s15  ;;  %487 = vst [vmem:[#allocation1] ss:$9 sm:$0xff] %v483_v13 }
  0x70   : > { %455 = vrot.lane.b32.xlu2 %v453_v14, %s1735_s15  ;;  %s1749_s15 = smov 98  }
  0x76   : > { %v488_v16 = vld [vmem:[#allocation1] sm:$0xff] }
  0x77   : > { %490 = vrot.lane.b32.xlu1 %v488_v16, %s1736_s13  ;;  %522 = vst [vmem:[#allocation1] ss:$9 sm:$0xff] %v518_v15  ;;  %s1750_s13 = smov 97  }
  0x78   : > { %484 = vrot.lane.b32.xlu2 %v1972_v6, %s1737_s10 }
  0x7e   : > { %v523_v18 = vld [vmem:[#allocation1] sm:$0xff] }
  0x7f   : > { %525 = vrot.lane.b32.xlu0 %v523_v18, %s1737_s10  ;;  %519 = vrot.lane.b32.xlu1 %v1972_v6, %s1738_s7  ;;  %557 = vst [vmem:[#allocation1] ss:$9 sm:$0xff] %v553_v17  ;;  %s1751_s10 = smov 96   ;;  %v1113_v18 = vld [vmem:[%s1953_s12] sm:$0x1] }
  0x86   : > { %v558_v20 = vld [vmem:[#allocation1] sm:$0xff] }
  0x87   : > { %554 = vrot.lane.b32.xlu0 %v1972_v6, %s1739_s8  ;;  %592 = vst [vmem:[#allocation1] ss:$9 sm:$0xff] %v588_v19  ;;  %560 = vrot.lane.b32.xlu2 %v558_v20, %s1740_s9  ;;  %s1753_s8 = smov 95   ;;  %s1754_s9 = smov 92  }
  0x8e   : > { %v593_v24 = vld [vmem:[#allocation1] sm:$0xff] }
  0x8f   : > { %595 = vrot.lane.b32.xlu1 %v593_v24, %s1738_s7  ;;  %627 = vst [vmem:[#allocation1] ss:$9 sm:$0xff] %v623_v23  ;;  %589 = vrot.lane.b32.xlu2 %v1972_v6, %s1741_s16  ;;  %s1752_s7 = smov 94   ;;  %s1755_s16 = smov 90   ;;  %v271_v24 = vld [vmem:[#allocation2] sm:$0xff] }
  0x96   : > { %v628_v26 = vld [vmem:[#allocation1] sm:$0xff] }
  0x97   : > { %662 = vst [vmem:[#allocation1] ss:$9 sm:$0xff] %v658_v25  ;;  %630 = vrot.lane.b32.xlu0 %v628_v26, %s1742_s29  ;;  %624 = vrot.lane.b32.xlu1 %v1972_v6, %s1742_s29  ;;  %s1756_s29 = smov 88  }
  0x9e   : > { %v663_v28 = vld [vmem:[#allocation1] sm:$0xff] }
  0x9f   : > { %659 = vrot.lane.b32.xlu0 %v1972_v6, %s1743_s30  ;;  %697 = vst [vmem:[#allocation1] ss:$9 sm:$0xff] %v693_v27  ;;  %665 = vrot.lane.b32.xlu2 %v663_v28, %s1744_s11  ;;  %s1758_s11 = smov 86  }
  0xa6   : > { %v698_v30 = vld [vmem:[#allocation1] sm:$0xff] }
  0xa7   : > { %700 = vrot.lane.b32.xlu1 %v698_v30, %s1743_s30  ;;  %732 = vst [vmem:[#allocation1] ss:$9 sm:$0xff] %v728_v29  ;;  %694 = vrot.lane.b32.xlu2 %v1972_v6, %s1745_s20  ;;  %s1757_s30 = smov 87   ;;  %v272_v29 = vld [vmem:[#allocation2 + $0x8] sm:$0xff] }
  0xae   : > { %v733_v32 = vld [vmem:[#allocation1] sm:$0xff] }
  0xaf   : > { %767 = vst [vmem:[#allocation1] ss:$9 sm:$0xff] %v763_v31  ;;  %735 = vrot.lane.b32.xlu0 %v733_v32, %s1746_s14  ;;  %729 = vrot.lane.b32.xlu1 %v1972_v6, %s1747_s1  ;;  %s1760_s14 = smov 82   ;;  %s1761_s1 = smov 85  }
  0xb6   : > { %v768_v34 = vld [vmem:[#allocation1] sm:$0xff] }
  0xb7   : > { %764 = vrot.lane.b32.xlu0 %v1972_v6, %s1748_s5  ;;  %802 = vst [vmem:[#allocation1] ss:$9 sm:$0xff] %v798_v33  ;;  %770 = vrot.lane.b32.xlu2 %v768_v34, %s1745_s20  ;;  %s1759_s20 = smov 84   ;;  %s1762_s5 = smov 80  }
  0xb9   : > { %v386_v35 = vpop.permute.xlu2 %385 }
  0xba   : > { %v391_v36 = vsel %vm283_vm1, %v386_v35, 0 }
  0xbb   : > { %400 = vmatpush.bf16.msra.mxu3 %v391_v36 }
  0xbe   : > { %v803_v38 = vld [vmem:[#allocation1] sm:$0xff] }
  0xbf   : > { %805 = vrot.lane.b32.xlu1 %v803_v38, %s1749_s15  ;;  %837 = vst [vmem:[#allocation1] ss:$9 sm:$0xff] %v833_v37  ;;  %799 = vrot.lane.b32.xlu2 %v1972_v6, %s1749_s15 }
  0xc1   : > { %v316_v39 = vpop.permute.xlu0 %315 }
  0xc2   : > { %v321_v40 = vsel %vm283_vm1, %v316_v39, 0  ;;  %v380_v41 = vpop.permute.xlu2 %379 }
  0xc3   : > { %330 = vmatpush.bf16.msra.mxu1 %v321_v40  ;;  %1319 = vmatmul.msk.bf16.vlgmr.msra.gmra.mxu3 %vm279_vm2, %v380_v41 }
  0xc6   : > { %v838_v43 = vld [vmem:[#allocation1] sm:$0xff] }
  0xc7   : > { %872 = vst [vmem:[#allocation1] ss:$9 sm:$0xff] %v868_v42  ;;  %840 = vrot.lane.b32.xlu0 %v838_v43, %s1750_s13  ;;  %834 = vrot.lane.b32.xlu1 %v1972_v6, %s1751_s10 }
  0xc9   : > { %v351_v44 = vpop.permute.xlu1 %350  ;;  %v310_v45 = vpop.permute.xlu0 %309 }
  0xca   : > { %1317 = vmatmul.msk.bf16.vlgmr.msra.gmra.mxu1 %vm279_vm2, %v310_v45  ;;  %v356_v46 = vsel %vm283_vm1, %v351_v44, 0  ;;  %v456_v47 = vpop.permute.xlu2 %455 }
  0xcb   : > { %365 = vmatpush.bf16.msra.mxu2 %v356_v46  ;;  %v461_v48 = vsel %vm283_vm1, %v456_v47, 0 }
  0xcc   : > { %470 = vmatpush.bf16.msrb.mxu1 %v461_v48 }
  0xce   : > { %v873_v50 = vld [vmem:[#allocation1] sm:$0xff] }
  0xcf   : > { %869 = vrot.lane.b32.xlu0 %v1972_v6, %s1752_s7  ;;  %907 = vst [vmem:[#allocation1] ss:$9 sm:$0xff] %v903_v49  ;;  %875 = vrot.lane.b32.xlu2 %v873_v50, %s1751_s10 }
  0xd1   : > { %v345_v51 = vpop.permute.xlu1 %344 }
  0xd2   : > { %1318 = vmatmul.msk.bf16.vlgmr.msra.gmra.mxu2 %vm279_vm2, %v345_v51  ;;  %v485_v55 = vpop.permute.xlu2 %484  ;;  %v296_v25 = vpop.f32.mrf.mxu0 }
  0xd3   : > { %v301_v26 = vadd.f32 %v296_v25, %v271_v24 }
  0xd5   : > { %304 = vst.msk [vmem:[#allocation2] sm:$0xff] %vm303_vm3, %v301_v26 }
  0xd6   : > { %v908_v53 = vld [vmem:[#allocation1] sm:$0xff] }
  0xd7   : > { %910 = vrot.lane.b32.xlu1 %v908_v53, %s1753_s8  ;;  %942 = vst [vmem:[#allocation1] ss:$9 sm:$0xff] %v938_v52  ;;  %904 = vrot.lane.b32.xlu2 %v1972_v6, %s1754_s9 }
  0xd9   : > { %v421_v54 = vpop.permute.xlu0 %420  ;;  %v415_v57 = vpop.permute.xlu1 %414 }
  0xda   : > { %v426_v56 = vsel %vm283_vm1, %v421_v54, 0  ;;  %v298_v30 = vpop.f32.mrf.mxu0 }
  0xdb   : > { %435 = vmatpush.bf16.msrb.mxu0 %v426_v56  ;;  %v302_v31 = vadd.f32 %v298_v30, %v272_v29 }
  0xdc   : > { %v306_v47 = vld [vmem:[#allocation2] sm:$0xff] }
  0xdd   : > { %305 = vst.msk [vmem:[#allocation2 + $0x8] sm:$0xff] %vm303_vm3, %v302_v31 }
  0xde   : > { %1320 = vmatmul.msk.bf16.vlgmr.msrb.gmra.mxu0 %vm279_vm2, %v415_v57  ;;  %v943_v59 = vld [vmem:[#allocation1] sm:$0xff] }
  0xdf   : > { %977 = vst [vmem:[#allocation1] ss:$9 sm:$0xff] %v973_v58  ;;  %945 = vrot.lane.b32.xlu0 %v943_v59, %s1752_s7  ;;  %939 = vrot.lane.b32.xlu1 %v1972_v6, %s1755_s16  ;;  %s1166_s7 = sld [smem:[#allocation3]] (!%p1341_p1) }
  0xe1   : > { %v450_v60 = vpop.permute.xlu0 %449  ;;  %v561_v61 = vpop.permute.xlu2 %560 }
  0xe2   : > { %1321 = vmatmul.msk.bf16.vlgmr.msrb.gmra.mxu1 %vm279_vm2, %v450_v60  ;;  %v566_v62 = vsel %vm283_vm1, %v561_v61, 0 }
  0xe3   : > { %575 = vmatpush.bf16.msra.mxu0 %v566_v62 }
  0xe4   : > { %v307_v53 = vld [vmem:[#allocation2 + $0x8] sm:$0xff] }
  0xe6   : > { %v978_v63 = vld [vmem:[#allocation1] sm:$0xff] }
  0xe7   : > { %974 = vrot.lane.b32.xlu0 %v1972_v6, %s1756_s29  ;;  %1012 = vst [vmem:[#allocation1] ss:$9 sm:$0xff] %v1008_v0  ;;  %980 = vrot.lane.b32.xlu2 %v978_v63, %s1756_s29 }
  0xe9   : > { %v491_v1 = vpop.permute.xlu1 %490  ;;  %v590_v7 = vpop.permute.xlu2 %589 }
  0xea   : > { %v496_v2 = vsel %vm283_vm1, %v491_v1, 0 }
  0xeb   : > { %505 = vmatpush.bf16.msrb.mxu2 %v496_v2 }
  0xee   : > { %1322 = vmatmul.msk.bf16.vlgmr.msrb.gmra.mxu2 %vm279_vm2, %v485_v55  ;;  %v1013_v4 = vld [vmem:[#allocation1] sm:$0xff] }
  0xef   : > { %1015 = vrot.lane.b32.xlu1 %v1013_v4, %s1757_s30  ;;  %1047 = vst [vmem:[#allocation1] ss:$9 sm:$0xff] %v1043_v3  ;;  %1009 = vrot.lane.b32.xlu2 %v1972_v6, %s1758_s11 }
  0xf1   : > { %v526_v5 = vpop.permute.xlu0 %525  ;;  %v520_v9 = vpop.permute.xlu1 %519 }
  0xf2   : > { %v531_v8 = vsel %vm283_vm1, %v526_v5, 0 }
  0xf3   : > { %540 = vmatpush.bf16.msrb.mxu3 %v531_v8 }
  0xf6   : > { %1323 = vmatmul.msk.bf16.vlgmr.msrb.gmra.mxu3 %vm279_vm2, %v520_v9  ;;  %v1048_v11 = vld [vmem:[#allocation1] sm:$0xff] }
  0xf7   : > { %1082 = vst [vmem:[#allocation1] ss:$9 sm:$0xff] %v1078_v10  ;;  %1050 = vrot.lane.b32.xlu0 %v1048_v11, %s1758_s11  ;;  %1044 = vrot.lane.b32.xlu1 %v1972_v6, %s1759_s20 }
  0xf9   : > { %v555_v12 = vpop.permute.xlu0 %554  ;;  %v666_v13 = vpop.permute.xlu2 %665 }
  0xfa   : > { %1324 = vmatmul.msk.bf16.vlgmr.msra.gmra.mxu0 %vm279_vm2, %v555_v12  ;;  %v671_v14 = vsel %vm283_vm1, %v666_v13, 0 }
  0xfb   : > { %680 = vmatpush.bf16.msra.mxu3 %v671_v14 }
  0xfe   : > { %v1083_v15 = vld [vmem:[#allocation1] sm:$0xff] }
  0xff   : > { %1079 = vrot.lane.b32.xlu0 %v1972_v6, %s1760_s14  ;;  %1085 = vrot.lane.b32.xlu2 %v1083_v15, %s1761_s1  ;;  %1117 = vst [vmem:[#allocation1] ss:$9 sm:$0xff] %v1113_v18 }
 0x101   : > { %v596_v16 = vpop.permute.xlu1 %595  ;;  %v695_v20 = vpop.permute.xlu2 %694 }
 0x102   : > { %v601_v17 = vsel %vm283_vm1, %v596_v16, 0 }
 0x103   : > { %610 = vmatpush.bf16.msra.mxu1 %v601_v17 }
 0x106   : > { %1325 = vmatmul.msk.bf16.vlgmr.msra.gmra.mxu1 %vm279_vm2, %v590_v7  ;;  %v1118_v22 = vld [vmem:[#allocation1] sm:$0xff] }
 0x107   : > { %1114 = vrot.lane.b32.xlu2 %v1972_v6, %s1762_s5  ;;  %1120 = vrot.lane.b32.xlu1 %v1118_v22, %s1759_s20 }
 0x109   : > { %v631_v19 = vpop.permute.xlu0 %630  ;;  %v625_v23 = vpop.permute.xlu1 %624 }
 0x10a   : > { %v636_v21 = vsel %vm283_vm1, %v631_v19, 0 }
 0x10b   : > { %645 = vmatpush.bf16.msra.mxu2 %v636_v21 }
 0x10e   : > { %1326 = vmatmul.msk.bf16.vlgmr.msra.gmra.mxu2 %vm279_vm2, %v625_v23 }
 0x111   : > { %v660_v27 = vpop.permute.xlu0 %659  ;;  %v771_v28 = vpop.permute.xlu2 %770 }
 0x112   : > { %1327 = vmatmul.msk.bf16.vlgmr.msra.gmra.mxu3 %vm279_vm2, %v660_v27  ;;  %v776_v6 = vsel %vm283_vm1, %v771_v28, 0 }
 0x113   : > { %785 = vmatpush.bf16.msrb.mxu2 %v776_v6 }
 0x119   : > { %v701_v32 = vpop.permute.xlu1 %700  ;;  %v800_v38 = vpop.permute.xlu2 %799 }
 0x11a   : > { %v706_v33 = vsel %vm283_vm1, %v701_v32, 0 }
 0x11b   : > { %715 = vmatpush.bf16.msrb.mxu0 %v706_v33 }
 0x11e   : > { %1328 = vmatmul.msk.bf16.vlgmr.msrb.gmra.mxu0 %vm279_vm2, %v695_v20 }
 0x121   : > { %v736_v34 = vpop.permute.xlu0 %735  ;;  %v730_v36 = vpop.permute.xlu1 %729 }
 0x122   : > { %v741_v35 = vsel %vm283_vm1, %v736_v34, 0 }
 0x123   : > { %750 = vmatpush.bf16.msrb.mxu1 %v741_v35 }
 0x126   : > { %1329 = vmatmul.msk.bf16.vlgmr.msrb.gmra.mxu1 %vm279_vm2, %v730_v36 }
 0x129   : > { %v765_v37 = vpop.permute.xlu0 %764  ;;  %v876_v41 = vpop.permute.xlu2 %875 }
 0x12a   : > { %1330 = vmatmul.msk.bf16.vlgmr.msrb.gmra.mxu2 %vm279_vm2, %v765_v37  ;;  %v881_v43 = vsel %vm283_vm1, %v876_v41, 0 }
 0x12b   : > { %890 = vmatpush.bf16.msra.mxu1 %v881_v43 }
 0x131   : > { %v806_v39 = vpop.permute.xlu1 %805  ;;  %v905_v52 = vpop.permute.xlu2 %904 }
 0x132   : > { %v811_v40 = vsel %vm283_vm1, %v806_v39, 0 }
 0x133   : > { %820 = vmatpush.bf16.msrb.mxu3 %v811_v40 }
 0x136   : > { %1331 = vmatmul.msk.bf16.vlgmr.msrb.gmra.mxu3 %vm279_vm2, %v800_v38 }
 0x139   : > { %v841_v42 = vpop.permute.xlu0 %840  ;;  %v835_v45 = vpop.permute.xlu1 %834 }
 0x13a   : > { %v846_v44 = vsel %vm283_vm1, %v841_v42, 0 }
 0x13b   : > { %855 = vmatpush.bf16.msra.mxu0 %v846_v44 }
 0x13e   : > { %1332 = vmatmul.msk.bf16.vlgmr.msra.gmra.mxu0 %vm279_vm2, %v835_v45 }
 0x141   : > { %v870_v46 = vpop.permute.xlu0 %869  ;;  %v981_v2 = vpop.permute.xlu2 %980 }
 0x142   : > { %1333 = vmatmul.msk.bf16.vlgmr.msra.gmra.mxu1 %vm279_vm2, %v870_v46  ;;  %v986_v4 = vsel %vm283_vm1, %v981_v2, 0 }
 0x143   : > { %995 = vmatpush.bf16.msrb.mxu0 %v986_v4 }
 0x146   : > { %v402_v62 = vpop.f32.mrf.mxu3 }
 0x147   : > { %v332_v48 = vpop.f32.mrf.mxu1 }
 0x148   : > { %v337_v49 = vadd.f32 %v332_v48, %v306_v47 }
 0x149   : > { %v911_v50 = vpop.permute.xlu1 %910  ;;  %v1010_v16 = vpop.permute.xlu2 %1009 }
 0x14a   : > { %339 = vst.msk [vmem:[#allocation2] sm:$0xff] %vm303_vm3, %v337_v49  ;;  %v916_v51 = vsel %vm283_vm1, %v911_v50, 0 }
 0x14b   : > { %925 = vmatpush.bf16.msra.mxu2 %v916_v51 }
 0x14e   : > { %1334 = vmatmul.msk.bf16.vlgmr.msra.gmra.mxu2 %vm279_vm2, %v905_v52  ;;  %v404_v10 = vpop.f32.mrf.mxu3 }
 0x14f   : > { %v334_v54 = vpop.f32.mrf.mxu1 }
 0x150   : > { %v338_v55 = vadd.f32 %v334_v54, %v307_v53 }
 0x151   : > { %v946_v56 = vpop.permute.xlu0 %945  ;;  %v341_v58 = vld [vmem:[#allocation2] sm:$0xff]  ;;  %v940_v59 = vpop.permute.xlu1 %939 }
 0x152   : > { %340 = vst.msk [vmem:[#allocation2 + $0x8] sm:$0xff] %vm303_vm3, %v338_v55  ;;  %v951_v57 = vsel %vm283_vm1, %v946_v56, 0 }
 0x153   : > { %960 = vmatpush.bf16.msra.mxu3 %v951_v57 }
 0x155   : > { %v367_v60 = vpop.f32.mrf.mxu2 }
 0x156   : > { %v372_v61 = vadd.f32 %v367_v60, %v341_v58  ;;  %1335 = vmatmul.msk.bf16.vlgmr.msra.gmra.mxu3 %vm279_vm2, %v940_v59 }
 0x158   : > { %374 = vst.msk [vmem:[#allocation2] sm:$0xff] %vm303_vm3, %v372_v61 }
 0x159   : > { %v342_v63 = vld [vmem:[#allocation2 + $0x8] sm:$0xff]  ;;  %v975_v7 = vpop.permute.xlu0 %974  ;;  %v1086_v26 = vpop.permute.xlu2 %1085 }
 0x15a   : > { %1336 = vmatmul.msk.bf16.vlgmr.msrb.gmra.mxu0 %vm279_vm2, %v975_v7  ;;  %v1091_v27 = vsel %vm283_vm1, %v1086_v26, 0 }
 0x15b   : > { %v437_v8 = vpop.f32.mrf.mxu0  ;;  %1100 = vmatpush.bf16.msrb.mxu3 %v1091_v27 }
 0x15d   : > { %v369_v0 = vpop.f32.mrf.mxu2 }
 0x15e   : > { %v373_v1 = vadd.f32 %v369_v0, %v342_v63 }
 0x15f   : > { %v376_v3 = vld [vmem:[#allocation2] sm:$0xff]  ;;  %v472_v19 = vpop.f32.mrf.mxu1 }
 0x160   : > { %v407_v5 = vadd.f32 %v402_v62, %v376_v3  ;;  %375 = vst.msk [vmem:[#allocation2 + $0x8] sm:$0xff] %vm303_vm3, %v373_v1 }
 0x161   : > { %v1016_v12 = vpop.permute.xlu1 %1015  ;;  %v1115_v42 = vpop.permute.xlu2 %1114 }
 0x162   : > { %409 = vst.msk [vmem:[#allocation2] sm:$0xff] %vm303_vm3, %v407_v5  ;;  %v1021_v14 = vsel %vm283_vm1, %v1016_v12, 0 }
 0x163   : > { %1030 = vmatpush.bf16.msrb.mxu1 %v1021_v14  ;;  %v439_v21 = vpop.f32.mrf.mxu0 }
 0x166   : > { %1337 = vmatmul.msk.bf16.vlgmr.msrb.gmra.mxu1 %vm279_vm2, %v1010_v16 }
 0x167   : > { %v377_v9 = vld [vmem:[#allocation2 + $0x8] sm:$0xff]  ;;  %v474_v28 = vpop.f32.mrf.mxu1 }
 0x168   : > { %v408_v11 = vadd.f32 %v404_v10, %v377_v9 }
 0x169   : > { %v411_v13 = vld [vmem:[#allocation2] sm:$0xff]  ;;  %v1051_v17 = vpop.permute.xlu0 %1050  ;;  %v1045_v22 = vpop.permute.xlu1 %1044 }
 0x16a   : > { %v442_v15 = vadd.f32 %v437_v8, %v411_v13  ;;  %410 = vst.msk [vmem:[#allocation2 + $0x8] sm:$0xff] %vm303_vm3, %v408_v11  ;;  %v1056_v18 = vsel %vm283_vm1, %v1051_v17, 0 }
 0x16b   : > { %1065 = vmatpush.bf16.msrb.mxu2 %v1056_v18 }
 0x16c   : > { %444 = vst.msk [vmem:[#allocation2] sm:$0xff] %vm303_vm3, %v442_v15 }
 0x16e   : > { %1338 = vmatmul.msk.bf16.vlgmr.msrb.gmra.mxu2 %vm279_vm2, %v1045_v22 }
 0x171   : > { %v412_v20 = vld [vmem:[#allocation2 + $0x8] sm:$0xff]  ;;  %v507_v29 = vpop.f32.mrf.mxu2  ;;  %v1080_v30 = vpop.permute.xlu0 %1079 }
 0x172   : > { %v443_v23 = vadd.f32 %v439_v21, %v412_v20  ;;  %1339 = vmatmul.msk.bf16.vlgmr.msrb.gmra.mxu3 %vm279_vm2, %v1080_v30 }
 0x173   : > { %v446_v24 = vld [vmem:[#allocation2] sm:$0xff] }
 0x174   : > { %v477_v25 = vadd.f32 %v472_v19, %v446_v24  ;;  %445 = vst.msk [vmem:[#allocation2 + $0x8] sm:$0xff] %vm303_vm3, %v443_v23 }
 0x176   : > { %479 = vst.msk [vmem:[#allocation2] sm:$0xff] %vm303_vm3, %v477_v25 }
 0x177   : > { %v577_v43 = vpop.f32.mrf.mxu0 }
 0x179   : > { %v509_v35 = vpop.f32.mrf.mxu2  ;;  %v542_v36 = vpop.f32.mrf.mxu3 }
 0x17a   : > { %v1121_v39 = vpop.permute.xlu1 %1120 }
 0x17b   : > { %v447_v6 = vld [vmem:[#allocation2 + $0x8] sm:$0xff]  ;;  %v1126_v41 = vsel %vm283_vm1, %v1121_v39, 0 }
 0x17c   : > { %v478_v31 = vadd.f32 %v474_v28, %v447_v6  ;;  %1135 = vmatpush.bf16.msra.mxu0 %v1126_v41 }
 0x17d   : > { %v481_v32 = vld [vmem:[#allocation2] sm:$0xff] }
 0x17e   : > { %480 = vst.msk [vmem:[#allocation2 + $0x8] sm:$0xff] %vm303_vm3, %v478_v31  ;;  %v512_v33 = vadd.f32 %v507_v29, %v481_v32 }
 0x17f   : > { %1340 = vmatmul.msk.bf16.vlgmr.msra.gmra.mxu0 %vm279_vm2, %v1115_v42  ;;  %v579_v49 = vpop.f32.mrf.mxu0 }
 0x180   : > { %514 = vst.msk [vmem:[#allocation2] sm:$0xff] %vm303_vm3, %v512_v33 }
 0x181   : > { %v544_v45 = vpop.f32.mrf.mxu3 }
 0x183   : > { %v612_v50 = vpop.f32.mrf.mxu1 }
 0x185   : > { %v482_v34 = vld [vmem:[#allocation2 + $0x8] sm:$0xff] }
 0x186   : > { %v513_v37 = vadd.f32 %v509_v35, %v482_v34 }
 0x187   : > { %v516_v38 = vld [vmem:[#allocation2] sm:$0xff] }
 0x188   : > { %515 = vst.msk [vmem:[#allocation2 + $0x8] sm:$0xff] %vm303_vm3, %v513_v37  ;;  %v547_v40 = vadd.f32 %v542_v36, %v516_v38 }
 0x18a   : > { %549 = vst.msk [vmem:[#allocation2] sm:$0xff] %vm303_vm3, %v547_v40 }
 0x18b   : > { %v614_v56 = vpop.f32.mrf.mxu1 }
 0x18f   : > { %v517_v44 = vld [vmem:[#allocation2 + $0x8] sm:$0xff] }
 0x190   : > { %v548_v46 = vadd.f32 %v544_v45, %v517_v44 }
 0x191   : > { %v551_v47 = vld [vmem:[#allocation2] sm:$0xff]  ;;  %v647_v57 = vpop.f32.mrf.mxu2 }
 0x192   : > { %550 = vst.msk [vmem:[#allocation2 + $0x8] sm:$0xff] %vm303_vm3, %v548_v46  ;;  %v582_v48 = vadd.f32 %v577_v43, %v551_v47 }
 0x194   : > { %584 = vst.msk [vmem:[#allocation2] sm:$0xff] %vm303_vm3, %v582_v48 }
 0x195   : > { %v682_v63 = vpop.f32.mrf.mxu3 }
 0x199   : > { %v552_v51 = vld [vmem:[#allocation2 + $0x8] sm:$0xff]  ;;  %v649_v62 = vpop.f32.mrf.mxu2 }
 0x19a   : > { %v583_v52 = vadd.f32 %v579_v49, %v552_v51 }
 0x19b   : > { %v586_v53 = vld [vmem:[#allocation2] sm:$0xff]  ;;  %v717_v3 = vpop.f32.mrf.mxu0 }
 0x19c   : > { %v617_v54 = vadd.f32 %v612_v50, %v586_v53  ;;  %585 = vst.msk [vmem:[#allocation2 + $0x8] sm:$0xff] %vm303_vm3, %v583_v52 }
 0x19d   : > { %v684_v5 = vpop.f32.mrf.mxu3 }
 0x19e   : > { %619 = vst.msk [vmem:[#allocation2] sm:$0xff] %vm303_vm3, %v617_v54 }
 0x1a3   : > { %v587_v55 = vld [vmem:[#allocation2 + $0x8] sm:$0xff]  ;;  %v719_v10 = vpop.f32.mrf.mxu0  ;;  %v752_v11 = vpop.f32.mrf.mxu1 }
 0x1a4   : > { %v618_v58 = vadd.f32 %v614_v56, %v587_v55 }
 0x1a5   : > { %v621_v59 = vld [vmem:[#allocation2] sm:$0xff] }
 0x1a6   : > { %620 = vst.msk [vmem:[#allocation2 + $0x8] sm:$0xff] %vm303_vm3, %v618_v58  ;;  %v652_v60 = vadd.f32 %v647_v57, %v621_v59 }
 0x1a8   : > { %654 = vst.msk [vmem:[#allocation2] sm:$0xff] %vm303_vm3, %v652_v60 }
 0x1ab   : > { %v754_v17 = vpop.f32.mrf.mxu1 }
 0x1ad   : > { %v622_v61 = vld [vmem:[#allocation2 + $0x8] sm:$0xff]  ;;  %v787_v18 = vpop.f32.mrf.mxu2 }
 0x1ae   : > { %v653_v0 = vadd.f32 %v649_v62, %v622_v61 }
 0x1af   : > { %v656_v1 = vld [vmem:[#allocation2] sm:$0xff] }
 0x1b0   : > { %655 = vst.msk [vmem:[#allocation2 + $0x8] sm:$0xff] %vm303_vm3, %v653_v0  ;;  %v687_v2 = vadd.f32 %v682_v63, %v656_v1 }
 0x1b2   : > { %689 = vst.msk [vmem:[#allocation2] sm:$0xff] %vm303_vm3, %v687_v2 }
 0x1b5   : > { %v789_v23 = vpop.f32.mrf.mxu2 }
 0x1b7   : > { %v657_v4 = vld [vmem:[#allocation2 + $0x8] sm:$0xff] }
 0x1b8   : > { %v688_v7 = vadd.f32 %v684_v5, %v657_v4 }
 0x1b9   : > { %v691_v8 = vld [vmem:[#allocation2] sm:$0xff]  ;;  %v822_v24 = vpop.f32.mrf.mxu3 }
 0x1ba   : > { %690 = vst.msk [vmem:[#allocation2 + $0x8] sm:$0xff] %vm303_vm3, %v688_v7  ;;  %v722_v9 = vadd.f32 %v717_v3, %v691_v8 }
 0x1bb   : > { %v857_v28 = vpop.f32.mrf.mxu0 }
 0x1bc   : > { %724 = vst.msk [vmem:[#allocation2] sm:$0xff] %vm303_vm3, %v722_v9 }
 0x1bf   : > { %v892_v34 = vpop.f32.mrf.mxu1 }
 0x1c1   : > { %v692_v12 = vld [vmem:[#allocation2 + $0x8] sm:$0xff]  ;;  %v824_v29 = vpop.f32.mrf.mxu3 }
 0x1c2   : > { %v723_v13 = vadd.f32 %v719_v10, %v692_v12 }
 0x1c3   : > { %v726_v14 = vld [vmem:[#allocation2] sm:$0xff]  ;;  %v859_v33 = vpop.f32.mrf.mxu0 }
 0x1c4   : > { %v757_v15 = vadd.f32 %v752_v11, %v726_v14  ;;  %725 = vst.msk [vmem:[#allocation2 + $0x8] sm:$0xff] %vm303_vm3, %v723_v13 }
 0x1c6   : > { %759 = vst.msk [vmem:[#allocation2] sm:$0xff] %vm303_vm3, %v757_v15 }
 0x1c7   : > { %v894_v40 = vpop.f32.mrf.mxu1 }
 0x1cb   : > { %v727_v16 = vld [vmem:[#allocation2 + $0x8] sm:$0xff] }
 0x1cc   : > { %v758_v19 = vadd.f32 %v754_v17, %v727_v16 }
 0x1cd   : > { %v761_v20 = vld [vmem:[#allocation2] sm:$0xff] }
 0x1ce   : > { %760 = vst.msk [vmem:[#allocation2 + $0x8] sm:$0xff] %vm303_vm3, %v758_v19  ;;  %v792_v21 = vadd.f32 %v787_v18, %v761_v20 }
 0x1d0   : > { %794 = vst.msk [vmem:[#allocation2] sm:$0xff] %vm303_vm3, %v792_v21 }
 0x1d1   : > { %v927_v41 = vpop.f32.mrf.mxu2 }
 0x1d5   : > { %v762_v22 = vld [vmem:[#allocation2 + $0x8] sm:$0xff] }
 0x1d6   : > { %v793_v25 = vadd.f32 %v789_v23, %v762_v22 }
 0x1d7   : > { %v796_v26 = vld [vmem:[#allocation2] sm:$0xff]  ;;  %v997_v51 = vpop.f32.mrf.mxu0 }
 0x1d8   : > { %795 = vst.msk [vmem:[#allocation2 + $0x8] sm:$0xff] %vm303_vm3, %v793_v25  ;;  %v827_v27 = vadd.f32 %v822_v24, %v796_v26 }
 0x1d9   : > { %v929_v46 = vpop.f32.mrf.mxu2  ;;  %v962_v47 = vpop.f32.mrf.mxu3 }
 0x1da   : > { %829 = vst.msk [vmem:[#allocation2] sm:$0xff] %vm303_vm3, %v827_v27 }
 0x1df   : > { %v797_v6 = vld [vmem:[#allocation2 + $0x8] sm:$0xff]  ;;  %v999_v57 = vpop.f32.mrf.mxu0 }
 0x1e0   : > { %v828_v30 = vadd.f32 %v824_v29, %v797_v6 }
 0x1e1   : > { %v831_v31 = vld [vmem:[#allocation2] sm:$0xff]  ;;  %v964_v53 = vpop.f32.mrf.mxu3 }
 0x1e2   : > { %830 = vst.msk [vmem:[#allocation2 + $0x8] sm:$0xff] %vm303_vm3, %v828_v30  ;;  %v862_v32 = vadd.f32 %v857_v28, %v831_v31 }
 0x1e3   : > { %v1032_v58 = vpop.f32.mrf.mxu1 }
 0x1e4   : > { %864 = vst.msk [vmem:[#allocation2] sm:$0xff] %vm303_vm3, %v862_v32 }
 0x1e9   : > { %v832_v35 = vld [vmem:[#allocation2 + $0x8] sm:$0xff] }
 0x1ea   : > { %v863_v36 = vadd.f32 %v859_v33, %v832_v35 }
 0x1eb   : > { %v866_v37 = vld [vmem:[#allocation2] sm:$0xff]  ;;  %v1034_v0 = vpop.f32.mrf.mxu1 }
 0x1ec   : > { %v897_v38 = vadd.f32 %v892_v34, %v866_v37  ;;  %865 = vst.msk [vmem:[#allocation2 + $0x8] sm:$0xff] %vm303_vm3, %v863_v36 }
 0x1ee   : > { %899 = vst.msk [vmem:[#allocation2] sm:$0xff] %vm303_vm3, %v897_v38 }
 0x1f1   : > { %v1067_v1 = vpop.f32.mrf.mxu2 }
 0x1f3   : > { %v867_v39 = vld [vmem:[#allocation2 + $0x8] sm:$0xff] }
 0x1f4   : > { %v898_v42 = vadd.f32 %v894_v40, %v867_v39 }
 0x1f5   : > { %v901_v43 = vld [vmem:[#allocation2] sm:$0xff]  ;;  %v1102_v8 = vpop.f32.mrf.mxu3 }
 0x1f6   : > { %900 = vst.msk [vmem:[#allocation2 + $0x8] sm:$0xff] %vm303_vm3, %v898_v42  ;;  %v932_v44 = vadd.f32 %v927_v41, %v901_v43 }
 0x1f8   : > { %934 = vst.msk [vmem:[#allocation2] sm:$0xff] %vm303_vm3, %v932_v44 }
 0x1f9   : > { %v1069_v7 = vpop.f32.mrf.mxu2 }
 0x1fc   : > { %v1137_v14 = vpop.f32.mrf.mxu0 }
 0x1fd   : > { %v902_v45 = vld [vmem:[#allocation2 + $0x8] sm:$0xff]  ;;  %v1104_v13 = vpop.f32.mrf.mxu3 }
 0x1fe   : > { %v933_v48 = vadd.f32 %v929_v46, %v902_v45 }
 0x1ff   : > { %v936_v49 = vld [vmem:[#allocation2] sm:$0xff] }
 0x200   : > { %935 = vst.msk [vmem:[#allocation2 + $0x8] sm:$0xff] %vm303_vm3, %v933_v48  ;;  %v967_v50 = vadd.f32 %v962_v47, %v936_v49 }
 0x202   : > { %969 = vst.msk [vmem:[#allocation2] sm:$0xff] %vm303_vm3, %v967_v50 }
 0x204   : > { %v1139_v19 = vpop.f32.mrf.mxu0 }
 0x207   : > { %v937_v52 = vld [vmem:[#allocation2 + $0x8] sm:$0xff] }
 0x208   : > { %v968_v54 = vadd.f32 %v964_v53, %v937_v52 }
 0x209   : > { %v971_v55 = vld [vmem:[#allocation2] sm:$0xff] }
 0x20a   : > { %970 = vst.msk [vmem:[#allocation2 + $0x8] sm:$0xff] %vm303_vm3, %v968_v54  ;;  %v1002_v56 = vadd.f32 %v997_v51, %v971_v55 }
 0x20c   : > { %1004 = vst.msk [vmem:[#allocation2] sm:$0xff] %vm303_vm3, %v1002_v56 }
 0x211   : > { %v972_v59 = vld [vmem:[#allocation2 + $0x8] sm:$0xff] }
 0x212   : > { %v1003_v60 = vadd.f32 %v999_v57, %v972_v59 }
 0x213   : > { %v1006_v61 = vld [vmem:[#allocation2] sm:$0xff] }
 0x214   : > { %v1037_v62 = vadd.f32 %v1032_v58, %v1006_v61  ;;  %1005 = vst.msk [vmem:[#allocation2 + $0x8] sm:$0xff] %vm303_vm3, %v1003_v60 }
 0x216   : > { %1039 = vst.msk [vmem:[#allocation2] sm:$0xff] %vm303_vm3, %v1037_v62 }
 0x21b   : > { %v1007_v63 = vld [vmem:[#allocation2 + $0x8] sm:$0xff] }
 0x21c   : > { %v1038_v2 = vadd.f32 %v1034_v0, %v1007_v63 }
 0x21d   : > { %v1041_v3 = vld [vmem:[#allocation2] sm:$0xff] }
 0x21e   : > { %1040 = vst.msk [vmem:[#allocation2 + $0x8] sm:$0xff] %vm303_vm3, %v1038_v2  ;;  %v1072_v4 = vadd.f32 %v1067_v1, %v1041_v3 }
 0x220   : > { %1074 = vst.msk [vmem:[#allocation2] sm:$0xff] %vm303_vm3, %v1072_v4 }
 0x225   : > { %v1042_v5 = vld [vmem:[#allocation2 + $0x8] sm:$0xff] }
 0x226   : > { %v1073_v9 = vadd.f32 %v1069_v7, %v1042_v5 }
 0x227   : > { %v1076_v10 = vld [vmem:[#allocation2] sm:$0xff] }
 0x228   : > { %1075 = vst.msk [vmem:[#allocation2 + $0x8] sm:$0xff] %vm303_vm3, %v1073_v9  ;;  %v1107_v11 = vadd.f32 %v1102_v8, %v1076_v10 }
 0x22a   : > { %1109 = vst.msk [vmem:[#allocation2] sm:$0xff] %vm303_vm3, %v1107_v11 }
 0x22f   : > { %v1077_v12 = vld [vmem:[#allocation2 + $0x8] sm:$0xff] }
 0x230   : > { %v1108_v15 = vadd.f32 %v1104_v13, %v1077_v12 }
 0x231   : > { %v1111_v16 = vld [vmem:[#allocation2] sm:$0xff] }
 0x232   : > { %1110 = vst.msk [vmem:[#allocation2 + $0x8] sm:$0xff] %vm303_vm3, %v1108_v15  ;;  %v1142_v17 = vadd.f32 %v1137_v14, %v1111_v16 }
 0x234   : > { %1144 = vst.msk [vmem:[#allocation2] sm:$0xff] %vm303_vm3, %v1142_v17 }
 0x238   : > { %1149 = sbr.rel (%p1341_p1) target bundleno = 706 (0x2c2), region = 52 }
 0x239   : > { %v1112_v18 = vld [vmem:[#allocation2 + $0x8] sm:$0xff] }
 0x23a   : > { %v1143_v20 = vadd.f32 %v1139_v19, %v1112_v18 }
 0x23c   : > { %1145 = vst.msk [vmem:[#allocation2 + $0x8] sm:$0xff] %vm303_vm3, %v1143_v20 }
 0x23d   : > { %v1152_v21 = vld [vmem:[%s2200_s2] sm:$0xff]  ;;  %v1763_v22 = vmov 0   ;;  %v1153_v23 = vld [vmem:[%s2200_s2 + $0x8] sm:$0xff]  ;;  %v1169_v25 = vstv %s1166_s7  ;;  %vm1176_vm5 = vcmask 486400  }
 0x23e   : > { %1520 = vset.pattern.permute.xlu0 %v1763_v22  ;;  %v1150_v24 = vld [vmem:[#allocation2] sm:$0xff] }
 0x23f   : > { %1156 = vperm.xlu0 %1520, %v1152_v21  }
 0x243   : > { %v1151_v30 = vld [vmem:[#allocation2 + $0x8] sm:$0xff] }
 0x247   : > { %1161 = vperm.xlu0 %1520, %v1153_v23  }
 0x2b1   : > { %v1157_v26 = vpop.permute.xlu0 %1156 }
 0x2b2   : > { %v1164_v27 = vadd.f32 %v1157_v26, %v1150_v24 }
 0x2b4   : > { %vm1167_vm4 = vcmp.ge.f32.partialorder %v1164_v27, 0.0  ;;  %v1170_v28 = vmul.f32 %v1169_v25, %v1164_v27 }
 0x2b6   : > { %v1172_v6 = vsel %vm1167_vm4, %v1164_v27, %v1170_v28 }
 0x2b7   : > { %v1174_v29 = vpack.c.bf16 %v1172_v6, %v1172_v6 }
 0x2b9   : > { %1177 = vst.msk [vmem:[%s1967_s6] sm:$0xf] %vm1176_vm5, %v1174_v29  ;;  %v1162_v31 = vpop.permute.xlu0 %1161 }
 0x2ba   : > { %v1165_v32 = vadd.f32 %v1162_v31, %v1151_v30 }
 0x2bc   : > { %vm1168_vm6 = vcmp.ge.f32.partialorder %v1165_v32, 0.0  ;;  %v1171_v33 = vmul.f32 %v1169_v25, %v1165_v32 }
 0x2be   : > { %v1173_v34 = vsel %vm1168_vm6, %v1165_v32, %v1171_v33 }
 0x2bf   : > { %v1175_v35 = vpack.c.bf16 %v1173_v34, %v1173_v34 }
 0x2c1   : > { %1178 = vst.msk [vmem:[%s1967_s6 + $0x4] sm:$0xf] %vm1176_vm5, %v1175_v35 }
 0x2c2 PF: > { %s1343_s23 = sshll.u32 %s1703_s3, 1  ;;  %s1350_s8 = smul.u32 12, %s1707_s24 }
 0x2c3   : > { %s1194_s9 = sshll.u32 %s1967_s6, 4  ;;  %s2228_s20 = sld [smem:[#allocation21_spill]]  ;;  %s1195_s9 = int_to_ptr.vmem [resolvable:$true] %s1194_s9 }
 0x2c4   : > { %s1191_s16 = sadd.s32 %s1350_s8, %s1343_s23  ;;  %s1180_s12 = scalar_lea.sflag [#allocation6], %s254_s4 }
 0x2c5   : > { %s1344_s29 = sshll.u32 %s1191_s16, 2 }
 0x2c9   : > { %s2229_s14 = smov %s2228_s20  ;;  %s1193_s1 = scalar_lea.hbm %s2228_s20, %s1344_s29 }
 0x2ca   : > { %s1196_s5 = sshll.u32 %s1193_s1, 4  ;;  %s1601_s6 = scalar_lea.hbm %s2229_s14, 96  ;;  %s1197_s5 = int_to_ptr.hbm [resolvable:$true] %s1196_s5 }
 0x2cb   : > { %s1595_s15 = sshra.s32 %s1197_s5, 4  ;;  %s1596_s15 = int_to_ptr.hbm [resolvable:$true] %s1595_s15 }
 0x2cc   : > { %s1597_s13 = scalar_lea.hbm %s1596_s15, 8  ;;  %p1602_p3 = scmp.lt.s32.totalorder %s1596_s15, %s2229_s14 }
 0x2cd   : > { %p1598_p4 = scmp.ne.s32.totalorder %s1596_s15, %s1597_s13  ;;  %p1603_p5 = scmp.lt.s32.totalorder %s1601_s6, %s1597_s13 }
 0x2cf   : > { %p1599_p12 = pnand %p1598_p4, %p1927_p9  ;;  %p1604_p6 = por %p1603_p5, %p1602_p3 }
 0x2d1   : > { %p1600_p0 = pneg %p1599_p12 }
 0x2d3   : > { %p1605_p7 = pnand %p1604_p6, %p1600_p0 }
 0x2d5   : > { %1608 = shalt.err (!%p1605_p7)
}
 0x2d6   : > { %s1764_s4 = smov 64   ;;  %s1765_s23 = smov 4  }
 0x2d7   : > { %1357 = dma.vmem_to_hbm [thread:$0]  (%p1927_p9), %s1195_s9, 128, %s1197_s5, %s1180_s12, %s1764_s4, %s1764_s4, %s1765_s23  }
 0x2d8 PF: > { %s2230_s8 = sld [smem:[#allocation13_spill]]  ;;  %p1374_p8 = scmp.ge.s32.totalorder %s1723_s28, 2 }
 0x2da   : > { %p1368_p11 = pnand %p1374_p8, %p1931_p10 }
 0x2dc   : > { %p1369_p13 = pneg %p1368_p11 }
 0x2de   : > { %s1211_s29 = sand.u32 1, %s2230_s8  }
 0x2df   : > { %s1212_s30 = scalar_lea.sflag [#allocation6], %s1211_s29 }
 0x2e0   : > { %1670 = dma.done.wait (%p1369_p13), %s1212_s30, 128  }
 0x2e1   : > { %1672 = vsyncadd (%p1369_p13), %s1212_s30, 4294967168  ;;  %s22_s28 = sadd.s32 1, %s1723_s28   ;;  %s2233_s25 = smov %s1939_s17 }
 0x2e2   : > { %p2154_p2 = scmp.ge.s32.totalorder %s22_s28, 62   ;;  %s2234_s23 = sld [smem:[#allocation14_spill]] }
 0x2e3   : > { %s2235_s3 = sld [smem:[#allocation15_spill]]  ;;  %s2239_s17 = smov %s1679_s18 }
 0x2e4   : > { %s2236_s9 = sld [smem:[#allocation16_spill]]  ;;  %s2240_s18 = smov %s1683_s19 }
 0x2e5   : > { %s2237_s1 = sld [smem:[#allocation17_spill]]  ;;  %s2241_s19 = smov %s2233_s25 }
 0x2e6   : > { %s2238_s5 = sld [smem:[#allocation18_spill]]  ;;  %s2242_s20 = smov %s1691_s21 }
 0x2e7   : > { %s2243_s21 = smov %s1695_s22  ;;  %s2244_s22 = smov %s1936_s26 }
 0x2e8   : > { %s2245_s24 = smov %s1719_s27  ;;  %21 = sbr.rel (!%p2154_p2) target bundleno = 15 (0xf), region = 94 }
 0x2ea   : > { %s2246_s25 = smov %s2236_s9 }
 0x2eb   : > { %s2247_s26 = smov %s2237_s1 }
 0x2ec   : > { %s2248_s27 = smov %s2238_s5 }
 0x2ed   :  { %1218 = vsyncpa [#allocation5], 1 }
 0x2ee   :  { %1220 = vsyncpa [#allocation5 + $0x1], 1 }
 0x2ef   :  { %1221 = vsyncpa [#allocation8], 1 }
 0x2f0   :  { %1222 = vsyncpa [#allocation6], 1 }
 0x2f1   :  { %1224 = vsyncpa [#allocation6 + $0x1], 1 }

</bundles_post_ra>
